<compile_context>
chip_gen: v6e
topology: v6e:2x2x1
jax: 0.10.0
libtpu: 0.0.40
codegen_flags: <defaults>
</compile_context>

<pallas_src>
import functools

import jax
import jax.numpy as jnp
from jax.experimental import pallas as pl
from jax.experimental.pallas import tpu as pltpu


# ---------------------------------------------------------------------------
# Pallas kernel: one output D-slice = sum over k^3 shifted matmuls + bias.
# ---------------------------------------------------------------------------
def _conv_block_kernel(x_ref, w_ref, b_ref, o_ref, *, k, stride, h_out, w_out):
    # x_ref: (Dp, Hp, Wp, C_in)          full padded sample (N squeezed)
    # w_ref: (k^3, C_in, C_out_pad)      conv weight, offset-major
    # b_ref: (1, C_out_pad)              bias (zero in padded channels)
    # o_ref: (h_out, w_out, C_out_pad)   one output D-slice (N, D squeezed)
    do = pl.program_id(1)
    c_out_pad = o_ref.shape[-1]

    # Fold the bias into the accumulator init (Activation.IDENTITY epilogue).
    acc = jnp.broadcast_to(
        b_ref[...].astype(jnp.float32), (h_out * w_out, c_out_pad)
    )

    h_span = (h_out - 1) * stride + 1
    w_span = (w_out - 1) * stride + 1

    for kd in range(k):
        # Dynamic index along the (leading) D axis of the padded sample.
        xs = x_ref[do * stride + kd]                 # (Hp, Wp, C_in)
        for kh in range(k):
            for kw in range(k):
                patch = xs[kh:kh + h_span:stride, kw:kw + w_span:stride, :]
                lhs = patch.reshape(h_out * w_out, patch.shape[-1])
                acc = acc + jnp.dot(
                    lhs,
                    w_ref[(kd * k + kh) * k + kw],
                    preferred_element_type=jnp.float32,
                )

    o_ref[...] = acc.reshape(h_out, w_out, c_out_pad).astype(o_ref.dtype)


def conv_block_3d(x_ncdhw, weight, bias, *, stride=1):
    """Forward of ConvolutionalBlock3d (batch_norm=False, IDENTITY activation).

    x_ncdhw: (N, C_in, D, H, W)      -- PyTorch NCDHW layout
    weight : (C_out, C_in, k, k, k)  -- PyTorch Conv3d weight layout
    bias   : (C_out,)
    returns: (N, C_out, Dout, Hout, Wout)
    """
    n, c_in, d, h, w = x_ncdhw.shape
    c_out, _, k, _, _ = weight.shape
    pad = k // 2
    d_out = (d + 2 * pad - k) // stride + 1
    h_out = (h + 2 * pad - k) // stride + 1
    w_out = (w + 2 * pad - k) // stride + 1

    # NCDHW -> NDHWC (channels-last), zero-pad spatial halo only (1x HBM copy).
    x = jnp.transpose(x_ncdhw, (0, 2, 3, 4, 1))
    x = jnp.pad(x, ((0, 0), (pad, pad), (pad, pad), (pad, pad), (0, 0)))
    dp, hp, wp = x.shape[1], x.shape[2], x.shape[3]

    # Lane-dense output channels: pad C_out up to a multiple of 128.
    c_out_pad = ((c_out + 127) // 128) * 128

    # Conv weight -> (kD, kH, kW, C_in, C_out) -> (k^3, C_in, C_out_pad),
    # offset-major / channel-minor; zero-pad the extra output channels.
    wmat = jnp.transpose(weight, (2, 3, 4, 1, 0)).reshape(k * k * k, c_in, c_out)
    wmat = jnp.pad(wmat, ((0, 0), (0, 0), (0, c_out_pad - c_out)))
    bias2d = jnp.pad(bias.reshape(1, c_out), ((0, 0), (0, c_out_pad - c_out)))

    kernel = functools.partial(
        _conv_block_kernel, k=k, stride=stride, h_out=h_out, w_out=w_out
    )

    elem_bytes = jnp.dtype(x_ncdhw.dtype).itemsize
    flops = 2 * n * d_out * h_out * w_out * (k ** 3) * c_in * c_out_pad
    bytes_accessed = (
        x.size + wmat.size + bias2d.size + n * d_out * h_out * w_out * c_out_pad
    ) * elem_bytes

    out = pl.pallas_call(
        kernel,
        out_shape=jax.ShapeDtypeStruct(
            (n, d_out, h_out, w_out, c_out_pad), x_ncdhw.dtype
        ),
        grid_spec=pltpu.PrefetchScalarGridSpec(
            num_scalar_prefetch=0,
            grid=(n, d_out),
            in_specs=[
                # Full padded sample; same block reused across the D axis.
                pl.BlockSpec((None, dp, hp, wp, c_in),
                             lambda i, j: (i, 0, 0, 0, 0)),
                pl.BlockSpec((k * k * k, c_in, c_out_pad),
                             lambda i, j: (0, 0, 0)),
                pl.BlockSpec((1, c_out_pad), lambda i, j: (0, 0)),
            ],
            out_specs=pl.BlockSpec(
                (None, None, h_out, w_out, c_out_pad),
                lambda i, j: (i, j, 0, 0, 0),
            ),
        ),
        compiler_params=pltpu.CompilerParams(
            dimension_semantics=("parallel", "parallel"),
        ),
        cost_estimate=pl.CostEstimate(
            flops=flops, transcendentals=0, bytes_accessed=bytes_accessed
        ),
    )(x, wmat, bias2d)

    out = out[..., :c_out]                           # drop padded channels
    # NDHWC -> NCDHW to match the PyTorch module's output layout.
    return jnp.transpose(out, (0, 4, 1, 2, 3))


if __name__ == "__main__":
    key = jax.random.PRNGKey(0)
    k_x, k_w, k_b = jax.random.split(key, 3)

    # Small shapes consistent with the module: N=2, C_in=4 -> C_out=8, D=H=W=8, k=3.
    N, C_IN, C_OUT, D, K = 2, 4, 8, 8, 3
    x = jax.random.normal(k_x, (N, C_IN, D, D, D), dtype=jnp.float32)

    # Deterministic Conv3d-style init (uniform in +-1/sqrt(fan_in)).
    fan_in = C_IN * K * K * K
    bound = 1.0 / (fan_in ** 0.5)
    weight = jax.random.uniform(
        k_w, (C_OUT, C_IN, K, K, K), dtype=jnp.float32, minval=-bound, maxval=bound
    )
    bias = jax.random.uniform(
        k_b, (C_OUT,), dtype=jnp.float32, minval=-bound, maxval=bound
    )

    out = conv_block_3d(x, weight, bias, stride=1)
    out = jax.block_until_ready(out)

    # Reference check against XLA's conv (same semantics as torch Conv3d, pad=k//2).
    ref = jax.lax.conv_general_dilated(
        x, weight,
        window_strides=(1, 1, 1),
        padding=[(K // 2, K // 2)] * 3,
        dimension_numbers=("NCDHW", "OIDHW", "NCDHW"),
    ) + bias.reshape(1, C_OUT, 1, 1, 1)
    assert out.shape == (N, C_OUT, D, D, D), out.shape
    assert jnp.allclose(out, ref, atol=1e-4, rtol=1e-4), float(
        jnp.max(jnp.abs(out - ref))
    )

    print("KERNEL_OK")
</pallas_src>

<mosaic_0001>
module attributes {stable_mosaic.version = 11 : i64} {
  func.func @_conv_block_kernel(%arg0: i32, %arg1: i32, %arg2: memref<1x10x10x10x4xf32, #tpu.memory_space<vmem>>, %arg3: memref<27x4x128xf32, #tpu.memory_space<vmem>>, %arg4: memref<1x128xf32, #tpu.memory_space<vmem>>, %arg5: memref<1x1x8x8x128xf32, #tpu.memory_space<vmem>>) attributes {dimension_semantics = [#tpu.dimension_semantics<parallel>, #tpu.dimension_semantics<parallel>], iteration_bounds = array<i64: 2, 8>, scalar_prefetch = 0 : i64, scratch_operands = 0 : i64, tpu.core_type = #tpu.core_type<tc>, window_params = [{transform_indices = @transform_0, window_bounds = array<i64: 1, 10, 10, 10, 4>}, {pipeline_mode = #tpu.pipeline_mode<synchronous>, transform_indices = @transform_1, window_bounds = array<i64: 27, 4, 128>}, {pipeline_mode = #tpu.pipeline_mode<synchronous>, transform_indices = @transform_2, window_bounds = array<i64: 1, 128>}, {transform_indices = @transform_3, window_bounds = array<i64: 1, 1, 8, 8, 128>}]} {
    %c0 = arith.constant 0 : index
    %c0_0 = arith.constant 0 : index
    %0 = vector.load %arg4[%c0, %c0_0] : memref<1x128xf32, #tpu.memory_space<vmem>>, vector<1x128xf32>
    %1 = vector.shape_cast %0 : vector<1x128xf32> to vector<1x128xf32>
    %2 = vector.broadcast %1 : vector<1x128xf32> to vector<64x128xf32>
    %c1_i32 = arith.constant 1 : i32
    %3 = arith.muli %arg1, %c1_i32 : i32
    %c0_i32 = arith.constant 0 : i32
    %4 = arith.addi %3, %c0_i32 : i32
    %c0_1 = arith.constant 0 : index
    %5 = arith.index_cast %4 : i32 to index
    %c0_2 = arith.constant 0 : index
    %c0_3 = arith.constant 0 : index
    %c0_4 = arith.constant 0 : index
    %6 = vector.load %arg2[%c0_1, %5, %c0_2, %c0_3, %c0_4] : memref<1x10x10x10x4xf32, #tpu.memory_space<vmem>>, vector<1x1x10x10x4xf32>
    %7 = vector.shape_cast %6 : vector<1x1x10x10x4xf32> to vector<10x10x4xf32>
    %8 = vector.extract_strided_slice %7 {offsets = [0, 0, 0], sizes = [8, 8, 4], strides = [1, 1, 1]} : vector<10x10x4xf32> to vector<8x8x4xf32>
    %9 = vector.shape_cast %8 : vector<8x8x4xf32> to vector<64x4xf32>
    %c0_5 = arith.constant 0 : index
    %c0_6 = arith.constant 0 : index
    %c0_7 = arith.constant 0 : index
    %10 = vector.load %arg3[%c0_5, %c0_6, %c0_7] : memref<27x4x128xf32, #tpu.memory_space<vmem>>, vector<1x4x128xf32>
    %11 = vector.shape_cast %10 : vector<1x4x128xf32> to vector<4x128xf32>
    %cst = arith.constant dense<0.000000e+00> : vector<64x128xf32>
    %12 = tpu.matmul %9, %11, %cst {dimension_numbers = #tpu.dot_dimension_numbers<[1], [0], [0], [1], [0, 0, 1, 1], [], []>} : vector<64x4xf32>, vector<4x128xf32>, vector<64x128xf32> -> vector<64x128xf32>
    %13 = arith.addf %2, %12 : vector<64x128xf32>
    %14 = vector.extract_strided_slice %7 {offsets = [0, 1, 0], sizes = [8, 8, 4], strides = [1, 1, 1]} : vector<10x10x4xf32> to vector<8x8x4xf32>
    %15 = vector.shape_cast %14 : vector<8x8x4xf32> to vector<64x4xf32>
    %c1 = arith.constant 1 : index
    %c0_8 = arith.constant 0 : index
    %c0_9 = arith.constant 0 : index
    %16 = vector.load %arg3[%c1, %c0_8, %c0_9] : memref<27x4x128xf32, #tpu.memory_space<vmem>>, vector<1x4x128xf32>
    %17 = vector.shape_cast %16 : vector<1x4x128xf32> to vector<4x128xf32>
    %cst_10 = arith.constant dense<0.000000e+00> : vector<64x128xf32>
    %18 = tpu.matmul %15, %17, %cst_10 {dimension_numbers = #tpu.dot_dimension_numbers<[1], [0], [0], [1], [0, 0, 1, 1], [], []>} : vector<64x4xf32>, vector<4x128xf32>, vector<64x128xf32> -> vector<64x128xf32>
    %19 = arith.addf %13, %18 : vector<64x128xf32>
    %20 = vector.extract_strided_slice %7 {offsets = [0, 2, 0], sizes = [8, 8, 4], strides = [1, 1, 1]} : vector<10x10x4xf32> to vector<8x8x4xf32>
    %21 = vector.shape_cast %20 : vector<8x8x4xf32> to vector<64x4xf32>
    %c2 = arith.constant 2 : index
    %c0_11 = arith.constant 0 : index
    %c0_12 = arith.constant 0 : index
    %22 = vector.load %arg3[%c2, %c0_11, %c0_12] : memref<27x4x128xf32, #tpu.memory_space<vmem>>, vector<1x4x128xf32>
    %23 = vector.shape_cast %22 : vector<1x4x128xf32> to vector<4x128xf32>
    %cst_13 = arith.constant dense<0.000000e+00> : vector<64x128xf32>
    %24 = tpu.matmul %21, %23, %cst_13 {dimension_numbers = #tpu.dot_dimension_numbers<[1], [0], [0], [1], [0, 0, 1, 1], [], []>} : vector<64x4xf32>, vector<4x128xf32>, vector<64x128xf32> -> vector<64x128xf32>
    %25 = arith.addf %19, %24 : vector<64x128xf32>
    %26 = vector.extract_strided_slice %7 {offsets = [1, 0, 0], sizes = [8, 8, 4], strides = [1, 1, 1]} : vector<10x10x4xf32> to vector<8x8x4xf32>
    %27 = vector.shape_cast %26 : vector<8x8x4xf32> to vector<64x4xf32>
    %c3 = arith.constant 3 : index
    %c0_14 = arith.constant 0 : index
    %c0_15 = arith.constant 0 : index
    %28 = vector.load %arg3[%c3, %c0_14, %c0_15] : memref<27x4x128xf32, #tpu.memory_space<vmem>>, vector<1x4x128xf32>
    %29 = vector.shape_cast %28 : vector<1x4x128xf32> to vector<4x128xf32>
    %cst_16 = arith.constant dense<0.000000e+00> : vector<64x128xf32>
    %30 = tpu.matmul %27, %29, %cst_16 {dimension_numbers = #tpu.dot_dimension_numbers<[1], [0], [0], [1], [0, 0, 1, 1], [], []>} : vector<64x4xf32>, vector<4x128xf32>, vector<64x128xf32> -> vector<64x128xf32>
    %31 = arith.addf %25, %30 : vector<64x128xf32>
    %32 = vector.extract_strided_slice %7 {offsets = [1, 1, 0], sizes = [8, 8, 4], strides = [1, 1, 1]} : vector<10x10x4xf32> to vector<8x8x4xf32>
    %33 = vector.shape_cast %32 : vector<8x8x4xf32> to vector<64x4xf32>
    %c4 = arith.constant 4 : index
    %c0_17 = arith.constant 0 : index
    %c0_18 = arith.constant 0 : index
    %34 = vector.load %arg3[%c4, %c0_17, %c0_18] : memref<27x4x128xf32, #tpu.memory_space<vmem>>, vector<1x4x128xf32>
    %35 = vector.shape_cast %34 : vector<1x4x128xf32> to vector<4x128xf32>
    %cst_19 = arith.constant dense<0.000000e+00> : vector<64x128xf32>
    %36 = tpu.matmul %33, %35, %cst_19 {dimension_numbers = #tpu.dot_dimension_numbers<[1], [0], [0], [1], [0, 0, 1, 1], [], []>} : vector<64x4xf32>, vector<4x128xf32>, vector<64x128xf32> -> vector<64x128xf32>
    %37 = arith.addf %31, %36 : vector<64x128xf32>
    %38 = vector.extract_strided_slice %7 {offsets = [1, 2, 0], sizes = [8, 8, 4], strides = [1, 1, 1]} : vector<10x10x4xf32> to vector<8x8x4xf32>
    %39 = vector.shape_cast %38 : vector<8x8x4xf32> to vector<64x4xf32>
    %c5 = arith.constant 5 : index
    %c0_20 = arith.constant 0 : index
    %c0_21 = arith.constant 0 : index
    %40 = vector.load %arg3[%c5, %c0_20, %c0_21] : memref<27x4x128xf32, #tpu.memory_space<vmem>>, vector<1x4x128xf32>
    %41 = vector.shape_cast %40 : vector<1x4x128xf32> to vector<4x128xf32>
    %cst_22 = arith.constant dense<0.000000e+00> : vector<64x128xf32>
    %42 = tpu.matmul %39, %41, %cst_22 {dimension_numbers = #tpu.dot_dimension_numbers<[1], [0], [0], [1], [0, 0, 1, 1], [], []>} : vector<64x4xf32>, vector<4x128xf32>, vector<64x128xf32> -> vector<64x128xf32>
    %43 = arith.addf %37, %42 : vector<64x128xf32>
    %44 = vector.extract_strided_slice %7 {offsets = [2, 0, 0], sizes = [8, 8, 4], strides = [1, 1, 1]} : vector<10x10x4xf32> to vector<8x8x4xf32>
    %45 = vector.shape_cast %44 : vector<8x8x4xf32> to vector<64x4xf32>
    %c6 = arith.constant 6 : index
    %c0_23 = arith.constant 0 : index
    %c0_24 = arith.constant 0 : index
    %46 = vector.load %arg3[%c6, %c0_23, %c0_24] : memref<27x4x128xf32, #tpu.memory_space<vmem>>, vector<1x4x128xf32>
    %47 = vector.shape_cast %46 : vector<1x4x128xf32> to vector<4x128xf32>
    %cst_25 = arith.constant dense<0.000000e+00> : vector<64x128xf32>
    %48 = tpu.matmul %45, %47, %cst_25 {dimension_numbers = #tpu.dot_dimension_numbers<[1], [0], [0], [1], [0, 0, 1, 1], [], []>} : vector<64x4xf32>, vector<4x128xf32>, vector<64x128xf32> -> vector<64x128xf32>
    %49 = arith.addf %43, %48 : vector<64x128xf32>
    %50 = vector.extract_strided_slice %7 {offsets = [2, 1, 0], sizes = [8, 8, 4], strides = [1, 1, 1]} : vector<10x10x4xf32> to vector<8x8x4xf32>
    %51 = vector.shape_cast %50 : vector<8x8x4xf32> to vector<64x4xf32>
    %c7 = arith.constant 7 : index
    %c0_26 = arith.constant 0 : index
    %c0_27 = arith.constant 0 : index
    %52 = vector.load %arg3[%c7, %c0_26, %c0_27] : memref<27x4x128xf32, #tpu.memory_space<vmem>>, vector<1x4x128xf32>
    %53 = vector.shape_cast %52 : vector<1x4x128xf32> to vector<4x128xf32>
    %cst_28 = arith.constant dense<0.000000e+00> : vector<64x128xf32>
    %54 = tpu.matmul %51, %53, %cst_28 {dimension_numbers = #tpu.dot_dimension_numbers<[1], [0], [0], [1], [0, 0, 1, 1], [], []>} : vector<64x4xf32>, vector<4x128xf32>, vector<64x128xf32> -> vector<64x128xf32>
    %55 = arith.addf %49, %54 : vector<64x128xf32>
    %56 = vector.extract_strided_slice %7 {offsets = [2, 2, 0], sizes = [8, 8, 4], strides = [1, 1, 1]} : vector<10x10x4xf32> to vector<8x8x4xf32>
    %57 = vector.shape_cast %56 : vector<8x8x4xf32> to vector<64x4xf32>
    %c8 = arith.constant 8 : index
    %c0_29 = arith.constant 0 : index
    %c0_30 = arith.constant 0 : index
    %58 = vector.load %arg3[%c8, %c0_29, %c0_30] : memref<27x4x128xf32, #tpu.memory_space<vmem>>, vector<1x4x128xf32>
    %59 = vector.shape_cast %58 : vector<1x4x128xf32> to vector<4x128xf32>
    %cst_31 = arith.constant dense<0.000000e+00> : vector<64x128xf32>
    %60 = tpu.matmul %57, %59, %cst_31 {dimension_numbers = #tpu.dot_dimension_numbers<[1], [0], [0], [1], [0, 0, 1, 1], [], []>} : vector<64x4xf32>, vector<4x128xf32>, vector<64x128xf32> -> vector<64x128xf32>
    %61 = arith.addf %55, %60 : vector<64x128xf32>
    %c1_i32_32 = arith.constant 1 : i32
    %62 = arith.muli %arg1, %c1_i32_32 : i32
    %c1_i32_33 = arith.constant 1 : i32
    %63 = arith.addi %62, %c1_i32_33 : i32
    %c0_34 = arith.constant 0 : index
    %64 = arith.index_cast %63 : i32 to index
    %c0_35 = arith.constant 0 : index
    %c0_36 = arith.constant 0 : index
    %c0_37 = arith.constant 0 : index
    %65 = vector.load %arg2[%c0_34, %64, %c0_35, %c0_36, %c0_37] : memref<1x10x10x10x4xf32, #tpu.memory_space<vmem>>, vector<1x1x10x10x4xf32>
    %66 = vector.shape_cast %65 : vector<1x1x10x10x4xf32> to vector<10x10x4xf32>
    %67 = vector.extract_strided_slice %66 {offsets = [0, 0, 0], sizes = [8, 8, 4], strides = [1, 1, 1]} : vector<10x10x4xf32> to vector<8x8x4xf32>
    %68 = vector.shape_cast %67 : vector<8x8x4xf32> to vector<64x4xf32>
    %c9 = arith.constant 9 : index
    %c0_38 = arith.constant 0 : index
    %c0_39 = arith.constant 0 : index
    %69 = vector.load %arg3[%c9, %c0_38, %c0_39] : memref<27x4x128xf32, #tpu.memory_space<vmem>>, vector<1x4x128xf32>
    %70 = vector.shape_cast %69 : vector<1x4x128xf32> to vector<4x128xf32>
    %cst_40 = arith.constant dense<0.000000e+00> : vector<64x128xf32>
    %71 = tpu.matmul %68, %70, %cst_40 {dimension_numbers = #tpu.dot_dimension_numbers<[1], [0], [0], [1], [0, 0, 1, 1], [], []>} : vector<64x4xf32>, vector<4x128xf32>, vector<64x128xf32> -> vector<64x128xf32>
    %72 = arith.addf %61, %71 : vector<64x128xf32>
    %73 = vector.extract_strided_slice %66 {offsets = [0, 1, 0], sizes = [8, 8, 4], strides = [1, 1, 1]} : vector<10x10x4xf32> to vector<8x8x4xf32>
    %74 = vector.shape_cast %73 : vector<8x8x4xf32> to vector<64x4xf32>
    %c10 = arith.constant 10 : index
    %c0_41 = arith.constant 0 : index
    %c0_42 = arith.constant 0 : index
    %75 = vector.load %arg3[%c10, %c0_41, %c0_42] : memref<27x4x128xf32, #tpu.memory_space<vmem>>, vector<1x4x128xf32>
    %76 = vector.shape_cast %75 : vector<1x4x128xf32> to vector<4x128xf32>
    %cst_43 = arith.constant dense<0.000000e+00> : vector<64x128xf32>
    %77 = tpu.matmul %74, %76, %cst_43 {dimension_numbers = #tpu.dot_dimension_numbers<[1], [0], [0], [1], [0, 0, 1, 1], [], []>} : vector<64x4xf32>, vector<4x128xf32>, vector<64x128xf32> -> vector<64x128xf32>
    %78 = arith.addf %72, %77 : vector<64x128xf32>
    %79 = vector.extract_strided_slice %66 {offsets = [0, 2, 0], sizes = [8, 8, 4], strides = [1, 1, 1]} : vector<10x10x4xf32> to vector<8x8x4xf32>
    %80 = vector.shape_cast %79 : vector<8x8x4xf32> to vector<64x4xf32>
    %c11 = arith.constant 11 : index
    %c0_44 = arith.constant 0 : index
    %c0_45 = arith.constant 0 : index
    %81 = vector.load %arg3[%c11, %c0_44, %c0_45] : memref<27x4x128xf32, #tpu.memory_space<vmem>>, vector<1x4x128xf32>
    %82 = vector.shape_cast %81 : vector<1x4x128xf32> to vector<4x128xf32>
    %cst_46 = arith.constant dense<0.000000e+00> : vector<64x128xf32>
    %83 = tpu.matmul %80, %82, %cst_46 {dimension_numbers = #tpu.dot_dimension_numbers<[1], [0], [0], [1], [0, 0, 1, 1], [], []>} : vector<64x4xf32>, vector<4x128xf32>, vector<64x128xf32> -> vector<64x128xf32>
    %84 = arith.addf %78, %83 : vector<64x128xf32>
    %85 = vector.extract_strided_slice %66 {offsets = [1, 0, 0], sizes = [8, 8, 4], strides = [1, 1, 1]} : vector<10x10x4xf32> to vector<8x8x4xf32>
    %86 = vector.shape_cast %85 : vector<8x8x4xf32> to vector<64x4xf32>
    %c12 = arith.constant 12 : index
    %c0_47 = arith.constant 0 : index
    %c0_48 = arith.constant 0 : index
    %87 = vector.load %arg3[%c12, %c0_47, %c0_48] : memref<27x4x128xf32, #tpu.memory_space<vmem>>, vector<1x4x128xf32>
    %88 = vector.shape_cast %87 : vector<1x4x128xf32> to vector<4x128xf32>
    %cst_49 = arith.constant dense<0.000000e+00> : vector<64x128xf32>
    %89 = tpu.matmul %86, %88, %cst_49 {dimension_numbers = #tpu.dot_dimension_numbers<[1], [0], [0], [1], [0, 0, 1, 1], [], []>} : vector<64x4xf32>, vector<4x128xf32>, vector<64x128xf32> -> vector<64x128xf32>
    %90 = arith.addf %84, %89 : vector<64x128xf32>
    %91 = vector.extract_strided_slice %66 {offsets = [1, 1, 0], sizes = [8, 8, 4], strides = [1, 1, 1]} : vector<10x10x4xf32> to vector<8x8x4xf32>
    %92 = vector.shape_cast %91 : vector<8x8x4xf32> to vector<64x4xf32>
    %c13 = arith.constant 13 : index
    %c0_50 = arith.constant 0 : index
    %c0_51 = arith.constant 0 : index
    %93 = vector.load %arg3[%c13, %c0_50, %c0_51] : memref<27x4x128xf32, #tpu.memory_space<vmem>>, vector<1x4x128xf32>
    %94 = vector.shape_cast %93 : vector<1x4x128xf32> to vector<4x128xf32>
    %cst_52 = arith.constant dense<0.000000e+00> : vector<64x128xf32>
    %95 = tpu.matmul %92, %94, %cst_52 {dimension_numbers = #tpu.dot_dimension_numbers<[1], [0], [0], [1], [0, 0, 1, 1], [], []>} : vector<64x4xf32>, vector<4x128xf32>, vector<64x128xf32> -> vector<64x128xf32>
    %96 = arith.addf %90, %95 : vector<64x128xf32>
    %97 = vector.extract_strided_slice %66 {offsets = [1, 2, 0], sizes = [8, 8, 4], strides = [1, 1, 1]} : vector<10x10x4xf32> to vector<8x8x4xf32>
    %98 = vector.shape_cast %97 : vector<8x8x4xf32> to vector<64x4xf32>
    %c14 = arith.constant 14 : index
    %c0_53 = arith.constant 0 : index
    %c0_54 = arith.constant 0 : index
    %99 = vector.load %arg3[%c14, %c0_53, %c0_54] : memref<27x4x128xf32, #tpu.memory_space<vmem>>, vector<1x4x128xf32>
    %100 = vector.shape_cast %99 : vector<1x4x128xf32> to vector<4x128xf32>
    %cst_55 = arith.constant dense<0.000000e+00> : vector<64x128xf32>
    %101 = tpu.matmul %98, %100, %cst_55 {dimension_numbers = #tpu.dot_dimension_numbers<[1], [0], [0], [1], [0, 0, 1, 1], [], []>} : vector<64x4xf32>, vector<4x128xf32>, vector<64x128xf32> -> vector<64x128xf32>
    %102 = arith.addf %96, %101 : vector<64x128xf32>
    %103 = vector.extract_strided_slice %66 {offsets = [2, 0, 0], sizes = [8, 8, 4], strides = [1, 1, 1]} : vector<10x10x4xf32> to vector<8x8x4xf32>
    %104 = vector.shape_cast %103 : vector<8x8x4xf32> to vector<64x4xf32>
    %c15 = arith.constant 15 : index
    %c0_56 = arith.constant 0 : index
    %c0_57 = arith.constant 0 : index
    %105 = vector.load %arg3[%c15, %c0_56, %c0_57] : memref<27x4x128xf32, #tpu.memory_space<vmem>>, vector<1x4x128xf32>
    %106 = vector.shape_cast %105 : vector<1x4x128xf32> to vector<4x128xf32>
    %cst_58 = arith.constant dense<0.000000e+00> : vector<64x128xf32>
    %107 = tpu.matmul %104, %106, %cst_58 {dimension_numbers = #tpu.dot_dimension_numbers<[1], [0], [0], [1], [0, 0, 1, 1], [], []>} : vector<64x4xf32>, vector<4x128xf32>, vector<64x128xf32> -> vector<64x128xf32>
    %108 = arith.addf %102, %107 : vector<64x128xf32>
    %109 = vector.extract_strided_slice %66 {offsets = [2, 1, 0], sizes = [8, 8, 4], strides = [1, 1, 1]} : vector<10x10x4xf32> to vector<8x8x4xf32>
    %110 = vector.shape_cast %109 : vector<8x8x4xf32> to vector<64x4xf32>
    %c16 = arith.constant 16 : index
    %c0_59 = arith.constant 0 : index
    %c0_60 = arith.constant 0 : index
    %111 = vector.load %arg3[%c16, %c0_59, %c0_60] : memref<27x4x128xf32, #tpu.memory_space<vmem>>, vector<1x4x128xf32>
    %112 = vector.shape_cast %111 : vector<1x4x128xf32> to vector<4x128xf32>
    %cst_61 = arith.constant dense<0.000000e+00> : vector<64x128xf32>
    %113 = tpu.matmul %110, %112, %cst_61 {dimension_numbers = #tpu.dot_dimension_numbers<[1], [0], [0], [1], [0, 0, 1, 1], [], []>} : vector<64x4xf32>, vector<4x128xf32>, vector<64x128xf32> -> vector<64x128xf32>
    %114 = arith.addf %108, %113 : vector<64x128xf32>
    %115 = vector.extract_strided_slice %66 {offsets = [2, 2, 0], sizes = [8, 8, 4], strides = [1, 1, 1]} : vector<10x10x4xf32> to vector<8x8x4xf32>
    %116 = vector.shape_cast %115 : vector<8x8x4xf32> to vector<64x4xf32>
    %c17 = arith.constant 17 : index
    %c0_62 = arith.constant 0 : index
    %c0_63 = arith.constant 0 : index
    %117 = vector.load %arg3[%c17, %c0_62, %c0_63] : memref<27x4x128xf32, #tpu.memory_space<vmem>>, vector<1x4x128xf32>
    %118 = vector.shape_cast %117 : vector<1x4x128xf32> to vector<4x128xf32>
    %cst_64 = arith.constant dense<0.000000e+00> : vector<64x128xf32>
    %119 = tpu.matmul %116, %118, %cst_64 {dimension_numbers = #tpu.dot_dimension_numbers<[1], [0], [0], [1], [0, 0, 1, 1], [], []>} : vector<64x4xf32>, vector<4x128xf32>, vector<64x128xf32> -> vector<64x128xf32>
    %120 = arith.addf %114, %119 : vector<64x128xf32>
    %c1_i32_65 = arith.constant 1 : i32
    %121 = arith.muli %arg1, %c1_i32_65 : i32
    %c2_i32 = arith.constant 2 : i32
    %122 = arith.addi %121, %c2_i32 : i32
    %c0_66 = arith.constant 0 : index
    %123 = arith.index_cast %122 : i32 to index
    %c0_67 = arith.constant 0 : index
    %c0_68 = arith.constant 0 : index
    %c0_69 = arith.constant 0 : index
    %124 = vector.load %arg2[%c0_66, %123, %c0_67, %c0_68, %c0_69] : memref<1x10x10x10x4xf32, #tpu.memory_space<vmem>>, vector<1x1x10x10x4xf32>
    %125 = vector.shape_cast %124 : vector<1x1x10x10x4xf32> to vector<10x10x4xf32>
    %126 = vector.extract_strided_slice %125 {offsets = [0, 0, 0], sizes = [8, 8, 4], strides = [1, 1, 1]} : vector<10x10x4xf32> to vector<8x8x4xf32>
    %127 = vector.shape_cast %126 : vector<8x8x4xf32> to vector<64x4xf32>
    %c18 = arith.constant 18 : index
    %c0_70 = arith.constant 0 : index
    %c0_71 = arith.constant 0 : index
    %128 = vector.load %arg3[%c18, %c0_70, %c0_71] : memref<27x4x128xf32, #tpu.memory_space<vmem>>, vector<1x4x128xf32>
    %129 = vector.shape_cast %128 : vector<1x4x128xf32> to vector<4x128xf32>
    %cst_72 = arith.constant dense<0.000000e+00> : vector<64x128xf32>
    %130 = tpu.matmul %127, %129, %cst_72 {dimension_numbers = #tpu.dot_dimension_numbers<[1], [0], [0], [1], [0, 0, 1, 1], [], []>} : vector<64x4xf32>, vector<4x128xf32>, vector<64x128xf32> -> vector<64x128xf32>
    %131 = arith.addf %120, %130 : vector<64x128xf32>
    %132 = vector.extract_strided_slice %125 {offsets = [0, 1, 0], sizes = [8, 8, 4], strides = [1, 1, 1]} : vector<10x10x4xf32> to vector<8x8x4xf32>
    %133 = vector.shape_cast %132 : vector<8x8x4xf32> to vector<64x4xf32>
    %c19 = arith.constant 19 : index
    %c0_73 = arith.constant 0 : index
    %c0_74 = arith.constant 0 : index
    %134 = vector.load %arg3[%c19, %c0_73, %c0_74] : memref<27x4x128xf32, #tpu.memory_space<vmem>>, vector<1x4x128xf32>
    %135 = vector.shape_cast %134 : vector<1x4x128xf32> to vector<4x128xf32>
    %cst_75 = arith.constant dense<0.000000e+00> : vector<64x128xf32>
    %136 = tpu.matmul %133, %135, %cst_75 {dimension_numbers = #tpu.dot_dimension_numbers<[1], [0], [0], [1], [0, 0, 1, 1], [], []>} : vector<64x4xf32>, vector<4x128xf32>, vector<64x128xf32> -> vector<64x128xf32>
    %137 = arith.addf %131, %136 : vector<64x128xf32>
    %138 = vector.extract_strided_slice %125 {offsets = [0, 2, 0], sizes = [8, 8, 4], strides = [1, 1, 1]} : vector<10x10x4xf32> to vector<8x8x4xf32>
    %139 = vector.shape_cast %138 : vector<8x8x4xf32> to vector<64x4xf32>
    %c20 = arith.constant 20 : index
    %c0_76 = arith.constant 0 : index
    %c0_77 = arith.constant 0 : index
    %140 = vector.load %arg3[%c20, %c0_76, %c0_77] : memref<27x4x128xf32, #tpu.memory_space<vmem>>, vector<1x4x128xf32>
    %141 = vector.shape_cast %140 : vector<1x4x128xf32> to vector<4x128xf32>
    %cst_78 = arith.constant dense<0.000000e+00> : vector<64x128xf32>
    %142 = tpu.matmul %139, %141, %cst_78 {dimension_numbers = #tpu.dot_dimension_numbers<[1], [0], [0], [1], [0, 0, 1, 1], [], []>} : vector<64x4xf32>, vector<4x128xf32>, vector<64x128xf32> -> vector<64x128xf32>
    %143 = arith.addf %137, %142 : vector<64x128xf32>
    %144 = vector.extract_strided_slice %125 {offsets = [1, 0, 0], sizes = [8, 8, 4], strides = [1, 1, 1]} : vector<10x10x4xf32> to vector<8x8x4xf32>
    %145 = vector.shape_cast %144 : vector<8x8x4xf32> to vector<64x4xf32>
    %c21 = arith.constant 21 : index
    %c0_79 = arith.constant 0 : index
    %c0_80 = arith.constant 0 : index
    %146 = vector.load %arg3[%c21, %c0_79, %c0_80] : memref<27x4x128xf32, #tpu.memory_space<vmem>>, vector<1x4x128xf32>
    %147 = vector.shape_cast %146 : vector<1x4x128xf32> to vector<4x128xf32>
    %cst_81 = arith.constant dense<0.000000e+00> : vector<64x128xf32>
    %148 = tpu.matmul %145, %147, %cst_81 {dimension_numbers = #tpu.dot_dimension_numbers<[1], [0], [0], [1], [0, 0, 1, 1], [], []>} : vector<64x4xf32>, vector<4x128xf32>, vector<64x128xf32> -> vector<64x128xf32>
    %149 = arith.addf %143, %148 : vector<64x128xf32>
    %150 = vector.extract_strided_slice %125 {offsets = [1, 1, 0], sizes = [8, 8, 4], strides = [1, 1, 1]} : vector<10x10x4xf32> to vector<8x8x4xf32>
    %151 = vector.shape_cast %150 : vector<8x8x4xf32> to vector<64x4xf32>
    %c22 = arith.constant 22 : index
    %c0_82 = arith.constant 0 : index
    %c0_83 = arith.constant 0 : index
    %152 = vector.load %arg3[%c22, %c0_82, %c0_83] : memref<27x4x128xf32, #tpu.memory_space<vmem>>, vector<1x4x128xf32>
    %153 = vector.shape_cast %152 : vector<1x4x128xf32> to vector<4x128xf32>
    %cst_84 = arith.constant dense<0.000000e+00> : vector<64x128xf32>
    %154 = tpu.matmul %151, %153, %cst_84 {dimension_numbers = #tpu.dot_dimension_numbers<[1], [0], [0], [1], [0, 0, 1, 1], [], []>} : vector<64x4xf32>, vector<4x128xf32>, vector<64x128xf32> -> vector<64x128xf32>
    %155 = arith.addf %149, %154 : vector<64x128xf32>
    %156 = vector.extract_strided_slice %125 {offsets = [1, 2, 0], sizes = [8, 8, 4], strides = [1, 1, 1]} : vector<10x10x4xf32> to vector<8x8x4xf32>
    %157 = vector.shape_cast %156 : vector<8x8x4xf32> to vector<64x4xf32>
    %c23 = arith.constant 23 : index
    %c0_85 = arith.constant 0 : index
    %c0_86 = arith.constant 0 : index
    %158 = vector.load %arg3[%c23, %c0_85, %c0_86] : memref<27x4x128xf32, #tpu.memory_space<vmem>>, vector<1x4x128xf32>
    %159 = vector.shape_cast %158 : vector<1x4x128xf32> to vector<4x128xf32>
    %cst_87 = arith.constant dense<0.000000e+00> : vector<64x128xf32>
    %160 = tpu.matmul %157, %159, %cst_87 {dimension_numbers = #tpu.dot_dimension_numbers<[1], [0], [0], [1], [0, 0, 1, 1], [], []>} : vector<64x4xf32>, vector<4x128xf32>, vector<64x128xf32> -> vector<64x128xf32>
    %161 = arith.addf %155, %160 : vector<64x128xf32>
    %162 = vector.extract_strided_slice %125 {offsets = [2, 0, 0], sizes = [8, 8, 4], strides = [1, 1, 1]} : vector<10x10x4xf32> to vector<8x8x4xf32>
    %163 = vector.shape_cast %162 : vector<8x8x4xf32> to vector<64x4xf32>
    %c24 = arith.constant 24 : index
    %c0_88 = arith.constant 0 : index
    %c0_89 = arith.constant 0 : index
    %164 = vector.load %arg3[%c24, %c0_88, %c0_89] : memref<27x4x128xf32, #tpu.memory_space<vmem>>, vector<1x4x128xf32>
    %165 = vector.shape_cast %164 : vector<1x4x128xf32> to vector<4x128xf32>
    %cst_90 = arith.constant dense<0.000000e+00> : vector<64x128xf32>
    %166 = tpu.matmul %163, %165, %cst_90 {dimension_numbers = #tpu.dot_dimension_numbers<[1], [0], [0], [1], [0, 0, 1, 1], [], []>} : vector<64x4xf32>, vector<4x128xf32>, vector<64x128xf32> -> vector<64x128xf32>
    %167 = arith.addf %161, %166 : vector<64x128xf32>
    %168 = vector.extract_strided_slice %125 {offsets = [2, 1, 0], sizes = [8, 8, 4], strides = [1, 1, 1]} : vector<10x10x4xf32> to vector<8x8x4xf32>
    %169 = vector.shape_cast %168 : vector<8x8x4xf32> to vector<64x4xf32>
    %c25 = arith.constant 25 : index
    %c0_91 = arith.constant 0 : index
    %c0_92 = arith.constant 0 : index
    %170 = vector.load %arg3[%c25, %c0_91, %c0_92] : memref<27x4x128xf32, #tpu.memory_space<vmem>>, vector<1x4x128xf32>
    %171 = vector.shape_cast %170 : vector<1x4x128xf32> to vector<4x128xf32>
    %cst_93 = arith.constant dense<0.000000e+00> : vector<64x128xf32>
    %172 = tpu.matmul %169, %171, %cst_93 {dimension_numbers = #tpu.dot_dimension_numbers<[1], [0], [0], [1], [0, 0, 1, 1], [], []>} : vector<64x4xf32>, vector<4x128xf32>, vector<64x128xf32> -> vector<64x128xf32>
    %173 = arith.addf %167, %172 : vector<64x128xf32>
    %174 = vector.extract_strided_slice %125 {offsets = [2, 2, 0], sizes = [8, 8, 4], strides = [1, 1, 1]} : vector<10x10x4xf32> to vector<8x8x4xf32>
    %175 = vector.shape_cast %174 : vector<8x8x4xf32> to vector<64x4xf32>
    %c26 = arith.constant 26 : index
    %c0_94 = arith.constant 0 : index
    %c0_95 = arith.constant 0 : index
    %176 = vector.load %arg3[%c26, %c0_94, %c0_95] : memref<27x4x128xf32, #tpu.memory_space<vmem>>, vector<1x4x128xf32>
    %177 = vector.shape_cast %176 : vector<1x4x128xf32> to vector<4x128xf32>
    %cst_96 = arith.constant dense<0.000000e+00> : vector<64x128xf32>
    %178 = tpu.matmul %175, %177, %cst_96 {dimension_numbers = #tpu.dot_dimension_numbers<[1], [0], [0], [1], [0, 0, 1, 1], [], []>} : vector<64x4xf32>, vector<4x128xf32>, vector<64x128xf32> -> vector<64x128xf32>
    %179 = arith.addf %173, %178 : vector<64x128xf32>
    %180 = vector.shape_cast %179 : vector<64x128xf32> to vector<8x8x128xf32>
    %c0_97 = arith.constant 0 : index
    %c0_98 = arith.constant 0 : index
    %c0_99 = arith.constant 0 : index
    %c0_100 = arith.constant 0 : index
    %c0_101 = arith.constant 0 : index
    %181 = vector.load %arg5[%c0_97, %c0_98, %c0_99, %c0_100, %c0_101] : memref<1x1x8x8x128xf32, #tpu.memory_space<vmem>>, vector<1x1x8x8x128xf32>
    %182 = vector.shape_cast %181 : vector<1x1x8x8x128xf32> to vector<8x8x128xf32>
    %183 = vector.shape_cast %180 : vector<8x8x128xf32> to vector<1x1x8x8x128xf32>
    tpu.vector_store %arg5[%c0_97, %c0_98, %c0_99, %c0_100, %c0_101], %183 {strides = array<i32>} : memref<1x1x8x8x128xf32, #tpu.memory_space<vmem>>, vector<1x1x8x8x128xf32>,
    return
  }
  func.func @transform_0(%arg0: i32, %arg1: i32) -> (i32, i32, i32, i32, i32) {
    %c0_i32 = arith.constant 0 : i32
    %c0_i32_0 = arith.constant 0 : i32
    %c0_i32_1 = arith.constant 0 : i32
    %c0_i32_2 = arith.constant 0 : i32
    %c0_i32_3 = arith.constant 0 : i32
    return %arg0, %c0_i32, %c0_i32_0, %c0_i32_1, %c0_i32_2 : i32, i32, i32, i32, i32
  }
  func.func @transform_1(%arg0: i32, %arg1: i32) -> (i32, i32, i32) {
    %c0_i32 = arith.constant 0 : i32
    %c0_i32_0 = arith.constant 0 : i32
    %c0_i32_1 = arith.constant 0 : i32
    %c0_i32_2 = arith.constant 0 : i32
    return %c0_i32, %c0_i32_0, %c0_i32_1 : i32, i32, i32
  }
  func.func @transform_2(%arg0: i32, %arg1: i32) -> (i32, i32) {
    %c0_i32 = arith.constant 0 : i32
    %c0_i32_0 = arith.constant 0 : i32
    %c0_i32_1 = arith.constant 0 : i32
    return %c0_i32, %c0_i32_0 : i32, i32
  }
  func.func @transform_3(%arg0: i32, %arg1: i32) -> (i32, i32, i32, i32, i32) {
    %c0_i32 = arith.constant 0 : i32
    %c0_i32_0 = arith.constant 0 : i32
    %c0_i32_1 = arith.constant 0 : i32
    %c0_i32_2 = arith.constant 0 : i32
    return %arg0, %arg1, %c0_i32, %c0_i32_0, %c0_i32_1 : i32, i32, i32, i32, i32
  }
}

</mosaic_0001>

<bundles_post_ra>
// kernel: tpu_custom_call.1
= control target key start
LH: loop header
LB: loop body
LE: loop exit
PB: predicated region body
PF: predicated region fallthrough
CT: control target
= control target key end

     0   :  { %8 = vsyncpa [#allocation3], 0  ;;  %s6297_s0 = inlined_call_operand.vmem [shape: f32[2,10,10,10,4], index: 0, kind: input, shape index: {}]   ;;  %s6298_s1 = inlined_call_operand.vmem [shape: f32[27,4,128], index: 1, kind: input, shape index: {}]   ;;  %s6299_s2 = inlined_call_operand.vmem [shape: f32[1,128], index: 2, kind: input, shape index: {}]   ;;  %s6300_s3 = inlined_call_operand.hbm [shape: f32[2,8,8,8,128], index: 3, kind: output, shape index: {}]  }
   0x1   :  { %10 = vsyncpa [#allocation3 + $0x1], 0  ;;  %s5112_s12 = smov 0   ;;  %s5114_s13 = smov 0  }
   0x2   :  { %s5116_s14 = smov 0   ;;  %s5118_s15 = smov 0  }
   0x3   :  { %s5120_s16 = smov 0   ;;  %s5122_s17 = smov 0  }
   0x4   :  { %s5124_s18 = smov 0   ;;  %s5126_s19 = smov 0  }
   0x5 LB: > { %s3975_s20 = sadd.s32 4294967295, %s5087_s19   ;;  %s3976_s21 = sadd.s32 4294967294, %s5087_s19   ;;  %s5087_s19 = sphi %s5126_s19, %s16_s19   ;;  %s5083_s18 = sphi %s5124_s18, %s6329_s18   ;;  %s5079_s17 = sphi %s5122_s17, %s6328_s17   ;;  %s5075_s16 = sphi %s5120_s16, %s6327_s16   ;;  %s5071_s15 = sphi %s5118_s15, %s6326_s15   ;;  %s5067_s14 = sphi %s5116_s14, %s6325_s14   ;;  %s5063_s13 = sphi %s5114_s13, %s6324_s13   ;;  %s5059_s12 = sphi %s5112_s12, %s6323_s12  }
   0x6   : > { %s25_s22 = sadd.s32 1, %s5079_s17  ;;  %s28_s23 = sadd.s32 1, %s5083_s18 }
   0x7   : > { %p26_p0 = scmp.ge.s32.totalorder %s25_s22, 8  ;;  %p115_p1 = scmp.ne.s32.totalorder %s5067_s14, %s5063_s13 }
   0x8   : > { %p116_p2 = scmp.eq.s32.totalorder %s3975_s20, 15  ;;  %p121_p5 = scmp.ne.s32.totalorder %s5063_s13, %s5059_s12 }
   0x9   : > { %s6331_s22 = smov (%p26_p0, %s25_s22), 0  ;;  %s6333_s23 = smov (!%p26_p0, %s28_s23), %s5083_s18 }
   0xa   : > { %s101_s24 = ssub.s32 %s5079_s17, %s6331_s22  ;;  %p5163_p3 = por %p116_p2, %p115_p1 }
   0xb   : > { %p30_p4 = scmp.ge.s32.totalorder %s6333_s23, 2  ;;  %p122_p6 = scmp.eq.s32.totalorder %s3976_s21, 15 }
   0xc   : > { %p3979_p7 = scmp.ge.s32.totalorder %s5087_s19, 1  ;;  %p154_p9 = scmp.lt.s32.totalorder %s5087_s19, 17 }
   0xd   : > { %s6335_s23 = smov (%p30_p4, %s6333_s23), 0  ;;  %p5172_p8 = por %p122_p6, %p121_p5 }
   0xe   : > { %s100_s27 = ssub.s32 %s5083_s18, %s6335_s23  ;;  %s105_s28 = sadd.s32 1, %s5067_s14 }
   0xf   : > { %s102_s29 = sor.u32 %s101_s24, %s100_s27  ;;  %p155_p10 = pnand %p3979_p7, %p154_p9 }
  0x10   : > { %p103_p11 = scmp.eq.s32.totalorder %s102_s29, 0 }
  0x11   : > { %158 = sbr.rel (%p155_p10) target bundleno = 458 (0x1ca), region = 32 }
  0x12   : > { %s5181_s30 = scalar_select %p103_p11, %s5067_s14, %s105_s28  }
  0x16   : > { %v212_v0 = vld [vmem:[%s6298_s1] sm:$0xf]  ;;  %vm238_vm0 = vcmask 1043456   ;;  %p178_p12 = scmp.lt.s32.totalorder %s5075_s16, 1  ;;  %v3992_v1 = vld [vmem:[%s6298_s1 + $0x4] sm:$0xf] }
  0x17   : > { %4919 = vmatprep.subr.msk.mxu1 %vm238_vm0, %v212_v0  ;;  %4541 = vmatprep.subr.msk.mxu0 %vm238_vm0, %v212_v0  ;;  %v4002_v2 = vld [vmem:[%s6298_s1 + $0x8] sm:$0xf]  ;;  %s190_s11 = smul.u32 160, %s5071_s15  ;;  %vm213_vm1 = vcmask 31744   ;;  %vm363_vm2 = vcmask 1046528   ;;  %vm522_vm3 = vcmask 1045504  }
  0x18   : > { %4920 = vmatpush3.msk.msra.mxu1 %vm238_vm0, %v212_v0  ;;  %4542 = vmatpush3.msk.msra.mxu0 %vm238_vm0, %v212_v0  ;;  %s179_s10 = scalar_select %p178_p12, %s5075_s16, 1  ;;  %v5216_v6 = vld [vmem:[%s6298_s1 + $0xc] sm:$0xf]  ;;  %v5221_v7 = vld [vmem:[%s6298_s1 + $0x10] sm:$0xf] }
  0x19   : > { %4555 = vmatprep.subr.msk.mxu1 %vm238_vm0, %v3992_v1  ;;  %4569 = vmatprep.subr.msk.mxu0 %vm238_vm0, %v4002_v2  ;;  %v4032_v47 = vld [vmem:[%s6298_s1 + $0x14] sm:$0xf]  ;;  %v4042_v52 = vld [vmem:[%s6298_s1 + $0x18] sm:$0xf]  ;;  %s4293_s29 = sshll.u32 %s5071_s15, 3  ;;  %s4294_s4 = sshll.u32 %s5075_s16, 6 }
  0x1a   : > { %s4921_s20 = smul.u32 1600, %s179_s10  ;;  %s3888_s5 = sadd.s32 %s4294_s4, %s4293_s29 }
  0x1b   : > { %s4295_s15 = sshll.u32 %s3888_s5, 7 }
  0x1c   : > { %s182_s27 = scalar_lea.vmem %s6297_s0, %s4921_s20  ;;  %s6238_s8 = scalar_lea.hbm %s6300_s3, %s4295_s15 }
  0x1d   : > { %s5204_s28 = scalar_lea.vmem %s182_s27, %s190_s11  ;;  %s5089_s11 = smov [#allocation2]  }
  0x1e   : > { %v192_v3 = vld [vmem:[%s5204_s28] sm:$0xff]  ;;  %v5211_v5 = vld [vmem:[%s5204_s28 + $0x10] sm:$0xff]  ;;  %v193_v19 = vld [vmem:[%s5204_s28 + $0x8] sm:$0x3]  ;;  %s4999_s20 = sshll.u32 %s5089_s11, 4  ;;  %s5000_s20 = int_to_ptr.vmem [resolvable:$false] %s4999_s20 }
  0x1f   : > { %v5208_v4 = vld [vmem:[%s5204_s28 + $0x40] sm:$0xff]  ;;  %4543 = vmatprep.mubr.msk.f32.mxu0 %vm213_vm1, %v192_v3  ;;  %v364_v8 = vrot.slane %v192_v3, 1  ;;  %v523_v9 = vrot.slane %v192_v3, 2  ;;  %v367_v10 = vrot.slane %v5211_v5, 1  ;;  %v5228_v11 = vld [vmem:[%s5204_s28 + $0x50] sm:$0xff]  ;;  %v526_v13 = vrot.slane %v5211_v5, 2 }
  0x20   : > { %4549 = vmatprep.mubr.msk.f32.mxu1 %vm213_vm1, %v5208_v4  ;;  %v5231_v12 = vld [vmem:[%s5204_s28 + $0x20] sm:$0xff]  ;;  %4544 = vmatmul.mubr.msk.f32.vlgmr.msra.gmra.mxu0 %vm213_vm1, %v5211_v5  ;;  %v5242_v15 = vld [vmem:[%s5204_s28 + $0x30] sm:$0xff]  ;;  %v195_v20 = vld [vmem:[%s5204_s28 + $0x18] sm:$0x3]  ;;  %v365_v22 = vrot.slane %v193_v19, 1  ;;  %v524_v23 = vrot.slane %v193_v19, 2 }
  0x21   : > { %4550 = vmatmul.mubr.msk.f32.vlgmr.msra.gmra.mxu1 %vm213_vm1, %v5228_v11  ;;  %v5239_v14 = vld [vmem:[%s5204_s28 + $0x60] sm:$0xff]  ;;  %v5245_v16 = vld [vmem:[%s5204_s28 + $0x70] sm:$0xff]  ;;  %v370_v17 = vrot.slane %v5231_v12, 1  ;;  %v529_v18 = vrot.slane %v5231_v12, 2  ;;  %4570 = vmatpush3.msk.msra.mxu0 %vm238_vm0, %v4002_v2  ;;  %v197_v21 = vld [vmem:[%s5204_s28 + $0x28] sm:$0x3] }
  0x22   : > { %4556 = vmatpush3.msk.msra.mxu1 %vm238_vm0, %v3992_v1  ;;  %4546 = vmatprep.mubr.msk.f32.mxu0 %vm213_vm1, %v5231_v12  ;;  %v368_v24 = vrot.slane %v195_v20, 1  ;;  %v527_v25 = vrot.slane %v195_v20, 2  ;;  %v199_v26 = vld [vmem:[%s5204_s28 + $0x38] sm:$0x3]  ;;  %v371_v27 = vrot.slane %v197_v21, 1  ;;  %v530_v28 = vrot.slane %v197_v21, 2 }
  0x23   : > { %4552 = vmatprep.mubr.msk.f32.mxu1 %vm213_vm1, %v5239_v14  ;;  %4583 = vmatprep.subr.msk.mxu1 %vm238_vm0, %v5216_v6  ;;  %v373_v29 = vrot.slane %v5242_v15, 1  ;;  %v374_v30 = vrot.slane %v199_v26, 1  ;;  %v201_v31 = vld [vmem:[%s5204_s28 + $0x48] sm:$0x3]  ;;  %v366_v32 = vsel %vm363_vm2, %v364_v8, %v365_v22  ;;  %v525_v33 = vsel %vm522_vm3, %v523_v9, %v524_v23  ;;  %v203_v39 = vld [vmem:[%s5204_s28 + $0x58] sm:$0x3] }
  0x24   : > { %4597 = vmatprep.subr.msk.mxu0 %vm238_vm0, %v5221_v7  ;;  %4547 = vmatmul.mubr.msk.f32.gmra.mxu0 %vm213_vm1, %v5242_v15  ;;  %v376_v34 = vrot.slane %v5208_v4, 1  ;;  %v369_v35 = vsel %vm363_vm2, %v367_v10, %v368_v24  ;;  %v5276_v36 = vsel %vm522_vm3, %v526_v13, %v527_v25  ;;  %v532_v37 = vrot.slane %v5242_v15, 2  ;;  %v205_v46 = vld [vmem:[%s5204_s28 + $0x68] sm:$0x3]  ;;  %v207_v60 = vld [vmem:[%s5204_s28 + $0x78] sm:$0x3] }
  0x25   : > { %4553 = vmatmul.mubr.msk.f32.gmra.mxu1 %vm213_vm1, %v5245_v16  ;;  %4571 = vmatprep.mubr.msk.f32.mxu0 %vm213_vm1, %v525_v33  ;;  %v533_v38 = vrot.slane %v199_v26, 2  ;;  %v377_v40 = vrot.slane %v201_v31, 1  ;;  %v535_v41 = vrot.slane %v5208_v4, 2  ;;  %v536_v42 = vrot.slane %v201_v31, 2  ;;  %v4052_v9 = vld [vmem:[%s6298_s1 + $0x1c] sm:$0xf] }
  0x26   : > { %4557 = vmatprep.mubr.msk.f32.mxu1 %vm213_vm1, %v366_v32  ;;  %v5282_v43 = vsel %vm363_vm2, %v370_v17, %v371_v27  ;;  %v5285_v44 = vsel %vm522_vm3, %v529_v18, %v530_v28  ;;  %v5288_v45 = vsel %vm363_vm2, %v373_v29, %v374_v30  ;;  %v379_v48 = vrot.slane %v5228_v11, 1  ;;  %v4062_v10 = vld [vmem:[%s6298_s1 + $0x20] sm:$0xf]  ;;  %v209_v13 = vld [vmem:[%s5204_s28 + $0x88] sm:$0x3]  ;;  %v5487_v31 = vld [vmem:[%s5204_s28 + $0xb0] sm:$0xff] }
  0x27   : > { %v380_v49 = vrot.slane %v203_v39, 1  ;;  %v538_v50 = vrot.slane %v5228_v11, 2  ;;  %v539_v51 = vrot.slane %v203_v39, 2  ;;  %v5307_v53 = vsel %vm522_vm3, %v532_v37, %v533_v38  ;;  %v4092_v20 = vld [vmem:[%s6298_s1 + $0x24] sm:$0xf]  ;;  %s5001_s21 = scalar_lea.vmem %s5000_s20, 2048 }
  0x28   : > { %4572 = vmatmul.mubr.msk.f32.vlgmr.msra.gmra.mxu0 %vm213_vm1, %v5276_v36  ;;  %v5310_v54 = vsel %vm363_vm2, %v376_v34, %v377_v40  ;;  %v5313_v55 = vsel %vm522_vm3, %v535_v41, %v536_v42  ;;  %v382_v56 = vrot.slane %v5239_v14, 1  ;;  %v383_v57 = vrot.slane %v205_v46, 1  ;;  %v4102_v21 = vld [vmem:[%s6298_s1 + $0x28] sm:$0xf]  ;;  %v211_v22 = vld [vmem:[%s5204_s28 + $0x98] sm:$0x3] }
  0x29   : > { %4558 = vmatmul.mubr.msk.f32.vlgmr.msra.gmra.mxu1 %vm213_vm1, %v369_v35  ;;  %4598 = vmatpush3.msk.msra.mxu0 %vm238_vm0, %v5221_v7  ;;  %v541_v58 = vrot.slane %v5239_v14, 2  ;;  %v542_v59 = vrot.slane %v205_v46, 2  ;;  %v5329_v61 = vsel %vm363_vm2, %v379_v48, %v380_v49  ;;  %v5332_v62 = vsel %vm522_vm3, %v538_v50, %v539_v51  ;;  %v5469_v23 = vld [vmem:[%s5204_s28 + $0xa0] sm:$0xff]  ;;  %v5472_v24 = vld [vmem:[%s5204_s28 + $0xa8] sm:$0x3]  ;;  %v5510_v40 = vld [vmem:[%s5204_s28 + $0xd0] sm:$0xff] }
  0x2a   : > { %4584 = vmatpush3.msk.msra.mxu1 %vm238_vm0, %v5216_v6  ;;  %4560 = vmatprep.mubr.msk.f32.mxu1 %vm213_vm1, %v5282_v43  ;;  %v385_v63 = vrot.slane %v5245_v16, 1  ;;  %v386_v0 = vrot.slane %v207_v60, 1  ;;  %v544_v1 = vrot.slane %v5245_v16, 2  ;;  %v545_v2 = vrot.slane %v207_v60, 2  ;;  %v5490_v32 = vld [vmem:[%s5204_s28 + $0xb8] sm:$0x3] }
  0x2b   : > { %4574 = vmatprep.mubr.msk.f32.mxu0 %vm213_vm1, %v5285_v44  ;;  %4611 = vmatprep.subr.msk.mxu1 %vm238_vm0, %v4032_v47  ;;  %v5341_v3 = vsel %vm363_vm2, %v382_v56, %v383_v57  ;;  %v5344_v6 = vsel %vm522_vm3, %v541_v58, %v542_v59  ;;  %v804_v18 = vrot.slane %v209_v13, 1  ;;  %v1172_v27 = vrot.slane %v211_v22, 1  ;;  %v5497_v33 = vld [vmem:[%s5204_s28 + $0xc0] sm:$0xff]  ;;  %v5500_v34 = vld [vmem:[%s5204_s28 + $0xc8] sm:$0x3]  ;;  %v5536_v51 = vld [vmem:[%s5204_s28 + $0xf0] sm:$0xff] }
  0x2c   : > { %4625 = vmatprep.subr.msk.mxu0 %vm238_vm0, %v4042_v52  ;;  %4575 = vmatmul.mubr.msk.f32.gmra.mxu0 %vm213_vm1, %v5307_v53  ;;  %v5355_v7 = vsel %vm363_vm2, %v385_v63, %v386_v0  ;;  %v5358_v8 = vsel %vm522_vm3, %v544_v1, %v545_v2  ;;  %v1295_v28 = vrot.slane %v211_v22, 2  ;;  %v1590_v29 = vrot.slane %v5469_v23, 1  ;;  %v5513_v41 = vld [vmem:[%s5204_s28 + $0xd8] sm:$0x3]  ;;  %v4132_v56 = vld [vmem:[%s6298_s1 + $0x34] sm:$0xf] }
  0x2d   : > { %4561 = vmatmul.mubr.msk.f32.gmra.mxu1 %vm213_vm1, %v5288_v45  ;;  %4577 = vmatprep.mubr.msk.f32.mxu0 %vm213_vm1, %v5313_v55  ;;  %v1591_v30 = vrot.slane %v5472_v24, 1  ;;  %v1593_v37 = vrot.slane %v5487_v31, 1  ;;  %v1594_v38 = vrot.slane %v5490_v32, 1  ;;  %v1596_v42 = vrot.slane %v5497_v33, 1  ;;  %v4142_v57 = vld [vmem:[%s6298_s1 + $0x38] sm:$0xf] }
  0x2e   : > { %4563 = vmatprep.mubr.msk.f32.mxu1 %vm213_vm1, %v5310_v54  ;;  %v1600_v48 = vrot.slane %v5513_v41, 1  ;;  %v1605_v59 = vrot.slane %v5536_v51, 1  ;;  %v5577_v0 = vld [vmem:[%s5204_s28 + $0x110] sm:$0xff]  ;;  %v5580_v1 = vld [vmem:[%s5204_s28 + $0x118] sm:$0x3] }
  0x2f   : > { %v1592_v39 = vsel %vm363_vm2, %v1590_v29, %v1591_v30  ;;  %v5529_v46 = vsel %vm363_vm2, %v1593_v37, %v1594_v38  ;;  %v1769_v29 = vrot.slane %v5577_v0, 2  ;;  %v1770_v30 = vrot.slane %v5580_v1, 2  ;;  %v4089_v37 = vld [vmem:[%s5204_s28 + $0x128] sm:$0x3] }
  0x30   : > { %4578 = vmatmul.mubr.msk.f32.gmra.mxu0 %vm213_vm1, %v5332_v62 }
  0x31   : > { %4564 = vmatmul.mubr.msk.f32.gmra.mxu1 %vm213_vm1, %v5329_v61  ;;  %4580 = vmatprep.mubr.msk.f32.mxu0 %vm213_vm1, %v5344_v6 }
  0x32   : > { %4566 = vmatprep.mubr.msk.f32.mxu1 %vm213_vm1, %v5341_v3 }
  0x34   : > { %4581 = vmatmul.mubr.msk.f32.gmra.mxu0 %vm213_vm1, %v5358_v8 }
  0x35   : > { %4567 = vmatmul.mubr.msk.f32.gmra.mxu1 %vm213_vm1, %v5355_v7  ;;  %4599 = vmatprep.mubr.msk.f32.mxu0 %vm213_vm1, %v369_v35 }
  0x36   : > { %4585 = vmatprep.mubr.msk.f32.mxu1 %vm213_vm1, %v5211_v5  ;;  %v208_v5 = vld [vmem:[%s5204_s28 + $0x80] sm:$0xff] }
  0x37   : > { %v803_v17 = vrot.slane %v208_v5, 1 }
  0x38   : > { %4600 = vmatmul.mubr.msk.f32.vlgmr.msra.gmra.mxu0 %vm213_vm1, %v5282_v43 }
  0x39   : > { %4586 = vmatmul.mubr.msk.f32.vlgmr.msra.gmra.mxu1 %vm213_vm1, %v5231_v12  ;;  %4626 = vmatpush3.msk.msra.mxu0 %vm238_vm0, %v4042_v52  ;;  %v805_v19 = vsel %vm363_vm2, %v803_v17, %v804_v18  ;;  %v5539_v52 = vld [vmem:[%s5204_s28 + $0xf8] sm:$0x3]  ;;  %v1754_v18 = vrot.slane %v5497_v33, 2 }
  0x3a   : > { %4612 = vmatpush3.msk.msra.mxu1 %vm238_vm0, %v4032_v47  ;;  %4588 = vmatprep.mubr.msk.f32.mxu1 %vm213_vm1, %v5242_v15  ;;  %v1599_v47 = vrot.slane %v5510_v40, 1  ;;  %v1606_v60 = vrot.slane %v5539_v52, 1 }
  0x3b   : > { %4602 = vmatprep.mubr.msk.f32.mxu0 %vm213_vm1, %v5288_v45  ;;  %4639 = vmatprep.subr.msk.mxu1 %vm238_vm0, %v4052_v9 }
  0x3c   : > { %4653 = vmatprep.subr.msk.mxu0 %vm238_vm0, %v4062_v10  ;;  %4603 = vmatmul.mubr.msk.f32.gmra.mxu0 %vm213_vm1, %v5310_v54  ;;  %v5563_v58 = vsel %vm363_vm2, %v1599_v47, %v1600_v48  ;;  %v5593_v2 = vsel %vm363_vm2, %v1605_v59, %v1606_v60  ;;  %v4222_v47 = vld [vmem:[%s6298_s1 + $0x50] sm:$0xf] }
  0x3d   : > { %4589 = vmatmul.mubr.msk.f32.gmra.mxu1 %vm213_vm1, %v5208_v4  ;;  %4605 = vmatprep.mubr.msk.f32.mxu0 %vm213_vm1, %v5329_v61  ;;  %v5828_v60 = vld [vmem:[%s5204_s28 + $0x190] sm:$0xff] }
  0x3e   : > { %4591 = vmatprep.mubr.msk.f32.mxu1 %vm213_vm1, %v5228_v11 }
  0x40   : > { %4606 = vmatmul.mubr.msk.f32.gmra.mxu0 %vm213_vm1, %v5341_v3 }
  0x41   : > { %4592 = vmatmul.mubr.msk.f32.gmra.mxu1 %vm213_vm1, %v5239_v14  ;;  %4608 = vmatprep.mubr.msk.f32.mxu0 %vm213_vm1, %v5355_v7 }
  0x42   : > { %4594 = vmatprep.mubr.msk.f32.mxu1 %vm213_vm1, %v5245_v16 }
  0x44   : > { %4609 = vmatmul.mubr.msk.f32.gmra.mxu0 %vm213_vm1, %v805_v19 }
  0x45   : > { %4595 = vmatmul.mubr.msk.f32.gmra.mxu1 %vm213_vm1, %v208_v5  ;;  %4627 = vmatprep.mubr.msk.f32.mxu0 %vm213_vm1, %v5231_v12  ;;  %v926_v12 = vrot.slane %v208_v5, 2 }
  0x46   : > { %4613 = vmatprep.mubr.msk.f32.mxu1 %vm213_vm1, %v5276_v36 }
  0x48   : > { %4628 = vmatmul.mubr.msk.f32.vlgmr.msra.gmra.mxu0 %vm213_vm1, %v5242_v15  ;;  %v927_v15 = vrot.slane %v209_v13, 2  ;;  %v1752_v13 = vrot.slane %v5490_v32, 2  ;;  %v5685_v32 = vsel %vm522_vm3, %v1769_v29, %v1770_v30 }
  0x49   : > { %4614 = vmatmul.mubr.msk.f32.vlgmr.msra.gmra.mxu1 %vm213_vm1, %v5285_v44  ;;  %4654 = vmatpush3.msk.msra.mxu0 %vm238_vm0, %v4062_v10  ;;  %v1751_v10 = vrot.slane %v5487_v31, 2 }
  0x4a   : > { %4640 = vmatpush3.msk.msra.mxu1 %vm238_vm0, %v4052_v9  ;;  %4616 = vmatprep.mubr.msk.f32.mxu1 %vm213_vm1, %v5307_v53  ;;  %v1749_v9 = vrot.slane %v5472_v24, 2  ;;  %v1764_v24 = vrot.slane %v5539_v52, 2  ;;  %v5785_v52 = vld [vmem:[%s5204_s28 + $0x160] sm:$0xff] }
  0x4b   : > { %4630 = vmatprep.mubr.msk.f32.mxu0 %vm213_vm1, %v5208_v4  ;;  %4667 = vmatprep.subr.msk.mxu1 %vm238_vm0, %v4092_v20  ;;  %v928_v4 = vsel %vm522_vm3, %v926_v12, %v927_v15  ;;  %v1758_v12 = vrot.slane %v5513_v41, 2  ;;  %v2029_v41 = vrot.slane %v4089_v37, 1 }
  0x4c   : > { %4681 = vmatprep.subr.msk.mxu0 %vm238_vm0, %v4102_v21  ;;  %4631 = vmatmul.mubr.msk.f32.gmra.mxu0 %vm213_vm1, %v5228_v11  ;;  %v210_v11 = vld [vmem:[%s5204_s28 + $0x90] sm:$0xff] }
  0x4d   : > { %4617 = vmatmul.mubr.msk.f32.gmra.mxu1 %vm213_vm1, %v5313_v55  ;;  %4633 = vmatprep.mubr.msk.f32.mxu0 %vm213_vm1, %v5239_v14  ;;  %v4112_v14 = vld [vmem:[%s6298_s1 + $0x2c] sm:$0xf]  ;;  %v1171_v25 = vrot.slane %v210_v11, 1  ;;  %v1294_v26 = vrot.slane %v210_v11, 2 }
  0x4e   : > { %4619 = vmatprep.mubr.msk.f32.mxu1 %vm213_vm1, %v5332_v62 }
  0x4f   : > { %v1173_v35 = vsel %vm363_vm2, %v1171_v25, %v1172_v27  ;;  %v1296_v36 = vsel %vm522_vm3, %v1294_v26, %v1295_v28 }
  0x50   : > { %4634 = vmatmul.mubr.msk.f32.gmra.mxu0 %vm213_vm1, %v5245_v16  ;;  %v4122_v16 = vld [vmem:[%s6298_s1 + $0x30] sm:$0xf] }
  0x51   : > { %4620 = vmatmul.mubr.msk.f32.gmra.mxu1 %vm213_vm1, %v5344_v6  ;;  %4636 = vmatprep.mubr.msk.f32.mxu0 %vm213_vm1, %v208_v5 }
  0x52   : > { %4622 = vmatprep.mubr.msk.f32.mxu1 %vm213_vm1, %v5358_v8 }
  0x54   : > { %4637 = vmatmul.mubr.msk.f32.gmra.mxu0 %vm213_vm1, %v210_v11 }
  0x55   : > { %4623 = vmatmul.mubr.msk.f32.gmra.mxu1 %vm213_vm1, %v928_v4  ;;  %4655 = vmatprep.mubr.msk.f32.mxu0 %vm213_vm1, %v5285_v44  ;;  %v5518_v44 = vld [vmem:[%s5204_s28 + $0xe0] sm:$0xff] }
  0x56   : > { %4641 = vmatprep.mubr.msk.f32.mxu1 %vm213_vm1, %v5282_v43  ;;  %v1597_v43 = vrot.slane %v5500_v34, 1  ;;  %v1602_v49 = vrot.slane %v5518_v44, 1  ;;  %v1760_v15 = vrot.slane %v5518_v44, 2 }
  0x58   : > { %4656 = vmatmul.mubr.msk.f32.vlgmr.msra.gmra.mxu0 %vm213_vm1, %v5307_v53  ;;  %v5542_v53 = vsel %vm363_vm2, %v1596_v42, %v1597_v43  ;;  %v2152_v42 = vrot.slane %v4089_v37, 2 }
  0x59   : > { %4642 = vmatmul.mubr.msk.f32.vlgmr.msra.gmra.mxu1 %vm213_vm1, %v5288_v45  ;;  %4682 = vmatpush3.msk.msra.mxu0 %vm238_vm0, %v4102_v21  ;;  %v5521_v45 = vld [vmem:[%s5204_s28 + $0xe8] sm:$0x3]  ;;  %v1757_v21 = vrot.slane %v5510_v40, 2 }
  0x5a   : > { %4668 = vmatpush3.msk.msra.mxu1 %vm238_vm0, %v4092_v20  ;;  %4644 = vmatprep.mubr.msk.f32.mxu1 %vm213_vm1, %v5310_v54  ;;  %v1603_v50 = vrot.slane %v5521_v45, 1  ;;  %v5545_v54 = vld [vmem:[%s5204_s28 + $0x100] sm:$0xff]  ;;  %v1753_v20 = vsel %vm522_vm3, %v1751_v10, %v1752_v13  ;;  %v4189_v13 = vld [vmem:[%s5204_s28 + $0x178] sm:$0x3] }
  0x5b   : > { %4658 = vmatprep.mubr.msk.f32.mxu0 %vm213_vm1, %v5313_v55  ;;  %4695 = vmatprep.subr.msk.mxu1 %vm238_vm0, %v4112_v14  ;;  %v5548_v55 = vld [vmem:[%s5204_s28 + $0x108] sm:$0x3]  ;;  %v5645_v22 = vsel %vm522_vm3, %v1757_v21, %v1758_v12  ;;  %v1766_v26 = vrot.slane %v5545_v54, 2 }
  0x5c   : > { %4709 = vmatprep.subr.msk.mxu0 %vm238_vm0, %v4122_v16  ;;  %4659 = vmatmul.mubr.msk.f32.gmra.mxu0 %vm213_vm1, %v5332_v62  ;;  %v1608_v62 = vrot.slane %v5545_v54, 1  ;;  %v1609_v63 = vrot.slane %v5548_v55, 1  ;;  %v1767_v27 = vrot.slane %v5548_v55, 2  ;;  %v5804_v55 = vld [vmem:[%s5204_s28 + $0x170] sm:$0xff]  ;;  %v4191_v21 = vld [vmem:[%s5204_s28 + $0x188] sm:$0x3] }
  0x5d   : > { %4645 = vmatmul.mubr.msk.f32.gmra.mxu1 %vm213_vm1, %v5329_v61  ;;  %4661 = vmatprep.mubr.msk.f32.mxu0 %vm213_vm1, %v5344_v6  ;;  %v5572_v61 = vsel %vm363_vm2, %v1602_v49, %v1603_v50  ;;  %v1612_v6 = vrot.slane %v5580_v1, 1  ;;  %v4182_v50 = vld [vmem:[%s5204_s28 + $0x140] sm:$0xff] }
  0x5e   : > { %4647 = vmatprep.mubr.msk.f32.mxu1 %vm213_vm1, %v5341_v3  ;;  %v1611_v3 = vrot.slane %v5577_v0, 1 }
  0x60   : > { %4662 = vmatmul.mubr.msk.f32.gmra.mxu0 %vm213_vm1, %v5358_v8  ;;  %v5599_v8 = vsel %vm363_vm2, %v1608_v62, %v1609_v63  ;;  %v5612_v5 = vsel %vm363_vm2, %v1611_v3, %v1612_v6  ;;  %v2815_v62 = vrot.slane %v4182_v50, 1  ;;  %v2973_v63 = vrot.slane %v4182_v50, 2 }
  0x61   : > { %4648 = vmatmul.mubr.msk.f32.gmra.mxu1 %vm213_vm1, %v5355_v7  ;;  %4664 = vmatprep.mubr.msk.f32.mxu0 %vm213_vm1, %v928_v4  ;;  %v1748_v7 = vrot.slane %v5469_v23, 2  ;;  %v1761_v4 = vrot.slane %v5521_v45, 2 }
  0x62   : > { %4650 = vmatprep.mubr.msk.f32.mxu1 %vm213_vm1, %v805_v19  ;;  %v1755_v19 = vrot.slane %v5500_v34, 2  ;;  %v4088_v34 = vld [vmem:[%s5204_s28 + $0x120] sm:$0xff] }
  0x63   : > { %v1750_v17 = vsel %vm522_vm3, %v1748_v7, %v1749_v9  ;;  %v5654_v25 = vsel %vm522_vm3, %v1760_v15, %v1761_v4  ;;  %v2028_v38 = vrot.slane %v4088_v34, 1  ;;  %v4187_v9 = vld [vmem:[%s5204_s28 + $0x168] sm:$0x3]  ;;  %v2979_v4 = vrot.slane %v5785_v52, 2 }
  0x64   : > { %4665 = vmatmul.mubr.msk.f32.gmra.mxu0 %vm213_vm1, %v1296_v36  ;;  %v5631_v11 = vsel %vm522_vm3, %v1754_v18, %v1755_v19  ;;  %v4202_v36 = vld [vmem:[%s6298_s1 + $0x48] sm:$0xf]  ;;  %v2821_v19 = vrot.slane %v5785_v52, 1 }
  0x65   : > { %4651 = vmatmul.mubr.msk.f32.gmra.mxu1 %vm213_vm1, %v1173_v35  ;;  %4683 = vmatprep.mubr.msk.f32.mxu0 %vm213_vm1, %v1592_v39  ;;  %v4172_v35 = vld [vmem:[%s6298_s1 + $0x44] sm:$0xf]  ;;  %v2151_v39 = vrot.slane %v4088_v34, 2  ;;  %v2030_v43 = vsel %vm363_vm2, %v2028_v38, %v2029_v41  ;;  %v4252_v38 = vld [vmem:[%s6298_s1 + $0x5c] sm:$0xf] }
  0x66   : > { %4669 = vmatprep.mubr.msk.f32.mxu1 %vm213_vm1, %v5469_v23  ;;  %v1763_v23 = vrot.slane %v5536_v51, 2 }
  0x67   : > { %v5731_v45 = vsel %vm522_vm3, %v2151_v39, %v2152_v42  ;;  %v4262_v39 = vld [vmem:[%s6298_s1 + $0x60] sm:$0xf] }
  0x68   : > { %4684 = vmatmul.mubr.msk.f32.vlgmr.msra.gmra.mxu0 %vm213_vm1, %v5529_v46  ;;  %v5669_v28 = vsel %vm522_vm3, %v1763_v23, %v1764_v24  ;;  %v2983_v23 = vrot.slane %v4189_v13, 2  ;;  %v4193_v24 = vld [vmem:[%s5204_s28 + $0x198] sm:$0x3] }
  0x69   : > { %4670 = vmatmul.mubr.msk.f32.vlgmr.msra.gmra.mxu1 %vm213_vm1, %v5487_v31  ;;  %4710 = vmatpush3.msk.msra.mxu0 %vm238_vm0, %v4122_v16  ;;  %v4162_v16 = vld [vmem:[%s6298_s1 + $0x40] sm:$0xf]  ;;  %v2989_v37 = vrot.slane %v4193_v24, 2 }
  0x6a   : > { %4696 = vmatpush3.msk.msra.mxu1 %vm238_vm0, %v4112_v14  ;;  %4672 = vmatprep.mubr.msk.f32.mxu1 %vm213_vm1, %v5497_v33  ;;  %v4152_v14 = vld [vmem:[%s6298_s1 + $0x3c] sm:$0xf] }
  0x6b   : > { %4686 = vmatprep.mubr.msk.f32.mxu0 %vm213_vm1, %v5542_v53  ;;  %4723 = vmatprep.subr.msk.mxu1 %vm238_vm0, %v4132_v56 }
  0x6c   : > { %4737 = vmatprep.subr.msk.mxu0 %vm238_vm0, %v4142_v57  ;;  %4687 = vmatmul.mubr.msk.f32.gmra.mxu0 %vm213_vm1, %v5563_v58 }
  0x6d   : > { %4673 = vmatmul.mubr.msk.f32.gmra.mxu1 %vm213_vm1, %v5510_v40  ;;  %4689 = vmatprep.mubr.msk.f32.mxu0 %vm213_vm1, %v5572_v61 }
  0x6e   : > { %4675 = vmatprep.mubr.msk.f32.mxu1 %vm213_vm1, %v5518_v44 }
  0x70   : > { %4690 = vmatmul.mubr.msk.f32.gmra.mxu0 %vm213_vm1, %v5593_v2 }
  0x71   : > { %4676 = vmatmul.mubr.msk.f32.gmra.mxu1 %vm213_vm1, %v5536_v51  ;;  %4692 = vmatprep.mubr.msk.f32.mxu0 %vm213_vm1, %v5599_v8 }
  0x72   : > { %4678 = vmatprep.mubr.msk.f32.mxu1 %vm213_vm1, %v5545_v54 }
  0x74   : > { %4693 = vmatmul.mubr.msk.f32.gmra.mxu0 %vm213_vm1, %v5612_v5 }
  0x75   : > { %4679 = vmatmul.mubr.msk.f32.gmra.mxu1 %vm213_vm1, %v5577_v0  ;;  %4711 = vmatprep.mubr.msk.f32.mxu0 %vm213_vm1, %v5487_v31  ;;  %v5674_v31 = vsel %vm522_vm3, %v1766_v26, %v1767_v27  ;;  %v2828_v26 = vrot.slane %v4191_v21, 1 }
  0x76   : > { %4697 = vmatprep.mubr.msk.f32.mxu1 %vm213_vm1, %v1750_v17 }
  0x78   : > { %4712 = vmatmul.mubr.msk.f32.vlgmr.msra.gmra.mxu0 %vm213_vm1, %v5497_v33 }
  0x79   : > { %4698 = vmatmul.mubr.msk.f32.vlgmr.msra.gmra.mxu1 %vm213_vm1, %v1753_v20  ;;  %4738 = vmatpush3.msk.msra.mxu0 %vm238_vm0, %v4142_v57  ;;  %v4183_v57 = vld [vmem:[%s5204_s28 + $0x148] sm:$0x3] }
  0x7a   : > { %4724 = vmatpush3.msk.msra.mxu1 %vm238_vm0, %v4132_v56  ;;  %4700 = vmatprep.mubr.msk.f32.mxu1 %vm213_vm1, %v5631_v11  ;;  %v5811_v56 = vld [vmem:[%s5204_s28 + $0x180] sm:$0xff]  ;;  %v2816_v1 = vrot.slane %v4183_v57, 1 }
  0x7b   : > { %4714 = vmatprep.mubr.msk.f32.mxu0 %vm213_vm1, %v5510_v40  ;;  %4751 = vmatprep.subr.msk.mxu1 %vm238_vm0, %v4152_v14  ;;  %v2985_v27 = vrot.slane %v5811_v56, 2 }
  0x7c   : > { %4765 = vmatprep.subr.msk.mxu0 %vm238_vm0, %v4162_v16  ;;  %4715 = vmatmul.mubr.msk.f32.gmra.mxu0 %vm213_vm1, %v5518_v44  ;;  %v2817_v17 = vsel %vm363_vm2, %v2815_v62, %v2816_v1  ;;  %v4272_v62 = vld [vmem:[%s6298_s1 + $0x64] sm:$0xf]  ;;  %v4199_v1 = vld [vmem:[%s5204_s28 + $0x1c8] sm:$0x3] }
  0x7d   : > { %4701 = vmatmul.mubr.msk.f32.gmra.mxu1 %vm213_vm1, %v5645_v22  ;;  %4717 = vmatprep.mubr.msk.f32.mxu0 %vm213_vm1, %v5536_v51 }
  0x7e   : > { %4703 = vmatprep.mubr.msk.f32.mxu1 %vm213_vm1, %v5654_v25 }
  0x80   : > { %4718 = vmatmul.mubr.msk.f32.gmra.mxu0 %vm213_vm1, %v5545_v54 }
  0x81   : > { %4704 = vmatmul.mubr.msk.f32.gmra.mxu1 %vm213_vm1, %v5669_v28  ;;  %4720 = vmatprep.mubr.msk.f32.mxu0 %vm213_vm1, %v5577_v0 }
  0x82   : > { %4706 = vmatprep.mubr.msk.f32.mxu1 %vm213_vm1, %v5674_v31 }
  0x84   : > { %4721 = vmatmul.mubr.msk.f32.gmra.mxu0 %vm213_vm1, %v4088_v34 }
  0x85   : > { %4707 = vmatmul.mubr.msk.f32.gmra.mxu1 %vm213_vm1, %v5685_v32  ;;  %4739 = vmatprep.mubr.msk.f32.mxu0 %vm213_vm1, %v1753_v20  ;;  %v2822_v20 = vrot.slane %v4187_v9, 1 }
  0x86   : > { %4725 = vmatprep.mubr.msk.f32.mxu1 %vm213_vm1, %v5529_v46  ;;  %v4212_v46 = vld [vmem:[%s6298_s1 + $0x4c] sm:$0xf] }
  0x87   : > { %v5871_v29 = vsel %vm363_vm2, %v2821_v19, %v2822_v20 }
  0x88   : > { %4740 = vmatmul.mubr.msk.f32.vlgmr.msra.gmra.mxu0 %vm213_vm1, %v5631_v11 }
  0x89   : > { %4726 = vmatmul.mubr.msk.f32.vlgmr.msra.gmra.mxu1 %vm213_vm1, %v5542_v53  ;;  %4766 = vmatpush3.msk.msra.mxu0 %vm238_vm0, %v4162_v16  ;;  %v2825_v16 = vrot.slane %v4189_v13, 1 }
  0x8a   : > { %4752 = vmatpush3.msk.msra.mxu1 %vm238_vm0, %v4152_v14  ;;  %4728 = vmatprep.mubr.msk.f32.mxu1 %vm213_vm1, %v5563_v58  ;;  %v2824_v14 = vrot.slane %v5804_v55, 1 }
  0x8b   : > { %4742 = vmatprep.mubr.msk.f32.mxu0 %vm213_vm1, %v5645_v22  ;;  %4779 = vmatprep.subr.msk.mxu1 %vm238_vm0, %v4172_v35 }
  0x8c   : > { %4793 = vmatprep.subr.msk.mxu0 %vm238_vm0, %v4202_v36  ;;  %4743 = vmatmul.mubr.msk.f32.gmra.mxu0 %vm213_vm1, %v5654_v25 }
  0x8d   : > { %4729 = vmatmul.mubr.msk.f32.gmra.mxu1 %vm213_vm1, %v5572_v61  ;;  %4745 = vmatprep.mubr.msk.f32.mxu0 %vm213_vm1, %v5669_v28 }
  0x8e   : > { %4731 = vmatprep.mubr.msk.f32.mxu1 %vm213_vm1, %v5593_v2 }
  0x90   : > { %4746 = vmatmul.mubr.msk.f32.gmra.mxu0 %vm213_vm1, %v5674_v31 }
  0x91   : > { %4732 = vmatmul.mubr.msk.f32.gmra.mxu1 %vm213_vm1, %v5599_v8  ;;  %4748 = vmatprep.mubr.msk.f32.mxu0 %vm213_vm1, %v5685_v32 }
  0x92   : > { %4734 = vmatprep.mubr.msk.f32.mxu1 %vm213_vm1, %v5612_v5 }
  0x94   : > { %4749 = vmatmul.mubr.msk.f32.gmra.mxu0 %vm213_vm1, %v5731_v45 }
  0x95   : > { %4735 = vmatmul.mubr.msk.f32.gmra.mxu1 %vm213_vm1, %v2030_v43  ;;  %4767 = vmatprep.mubr.msk.f32.mxu0 %vm213_vm1, %v5542_v53  ;;  %v5794_v53 = vld [vmem:[%s6298_s1 + $0x54] sm:$0xf] }
  0x96   : > { %4753 = vmatprep.mubr.msk.f32.mxu1 %vm213_vm1, %v5497_v33  ;;  %v4090_v33 = vld [vmem:[%s5204_s28 + $0x130] sm:$0xff] }
  0x97   : > { %v2519_v59 = vrot.slane %v4090_v33, 2 }
  0x98   : > { %4768 = vmatmul.mubr.msk.f32.vlgmr.msra.gmra.mxu0 %vm213_vm1, %v5563_v58  ;;  %v4185_v58 = vld [vmem:[%s5204_s28 + $0x158] sm:$0x3] }
  0x99   : > { %4754 = vmatmul.mubr.msk.f32.vlgmr.msra.gmra.mxu1 %vm213_vm1, %v5510_v40  ;;  %4794 = vmatpush3.msk.msra.mxu0 %vm238_vm0, %v4202_v36  ;;  %v4091_v40 = vld [vmem:[%s5204_s28 + $0x138] sm:$0x3]  ;;  %v2819_v7 = vrot.slane %v4185_v58, 1  ;;  %v2988_v36 = vrot.slane %v5828_v60, 2 }
  0x9a   : > { %4780 = vmatpush3.msk.msra.mxu1 %vm238_vm0, %v4172_v35  ;;  %4756 = vmatprep.mubr.msk.f32.mxu1 %vm213_vm1, %v5518_v44  ;;  %v2396_v44 = vrot.slane %v4090_v33, 1  ;;  %v2397_v48 = vrot.slane %v4091_v40, 1  ;;  %v5883_v35 = vsel %vm363_vm2, %v2824_v14, %v2825_v16 }
  0x9b   : > { %4770 = vmatprep.mubr.msk.f32.mxu0 %vm213_vm1, %v5572_v61  ;;  %4807 = vmatprep.subr.msk.mxu1 %vm238_vm0, %v4212_v46  ;;  %v2520_v61 = vrot.slane %v4091_v40, 2  ;;  %v4197_v40 = vld [vmem:[%s5204_s28 + $0x1b8] sm:$0x3] }
  0x9c   : > { %4821 = vmatprep.subr.msk.mxu0 %vm238_vm0, %v4222_v47  ;;  %4771 = vmatmul.mubr.msk.f32.gmra.mxu0 %vm213_vm1, %v5593_v2  ;;  %v2398_v49 = vsel %vm363_vm2, %v2396_v44, %v2397_v48  ;;  %v2974_v2 = vrot.slane %v4183_v57, 2  ;;  %v5922_v48 = vsel %vm522_vm3, %v2988_v36, %v2989_v37 }
  0x9d   : > { %4757 = vmatmul.mubr.msk.f32.gmra.mxu1 %vm213_vm1, %v5536_v51  ;;  %4773 = vmatprep.mubr.msk.f32.mxu0 %vm213_vm1, %v5599_v8  ;;  %v5782_v51 = vld [vmem:[%s5204_s28 + $0x150] sm:$0xff]  ;;  %v2977_v8 = vrot.slane %v4185_v58, 2  ;;  %v2521_v10 = vsel %vm522_vm3, %v2519_v59, %v2520_v61 }
  0x9e   : > { %4759 = vmatprep.mubr.msk.f32.mxu1 %vm213_vm1, %v5545_v54  ;;  %v5799_v54 = vld [vmem:[%s6298_s1 + $0x58] sm:$0xf]  ;;  %v2818_v3 = vrot.slane %v5782_v51, 1  ;;  %v2976_v6 = vrot.slane %v5782_v51, 2  ;;  %v2975_v18 = vsel %vm522_vm3, %v2973_v63, %v2974_v2  ;;  %v4282_v63 = vld [vmem:[%s6298_s1 + $0x68] sm:$0xf] }
  0xa0   : > { %4774 = vmatmul.mubr.msk.f32.gmra.mxu0 %vm213_vm1, %v5612_v5  ;;  %v5846_v5 = vld [vmem:[%s5204_s28 + $0x1b0] sm:$0xff]  ;;  %v5854_v12 = vsel %vm363_vm2, %v2818_v3, %v2819_v7  ;;  %v5857_v15 = vsel %vm522_vm3, %v2976_v6, %v2977_v8  ;;  %v3254_v3 = vrot.slane %v4199_v1, 1 }
  0xa1   : > { %4760 = vmatmul.mubr.msk.f32.gmra.mxu1 %vm213_vm1, %v5577_v0  ;;  %4776 = vmatprep.mubr.msk.f32.mxu0 %vm213_vm1, %v2030_v43  ;;  %v5831_v0 = vld [vmem:[%s5204_s28 + $0x1a0] sm:$0xff] }
  0xa2   : > { %4762 = vmatprep.mubr.msk.f32.mxu1 %vm213_vm1, %v4088_v34  ;;  %v4195_v34 = vld [vmem:[%s5204_s28 + $0x1a8] sm:$0x3] }
  0xa4   : > { %4777 = vmatmul.mubr.msk.f32.gmra.mxu0 %vm213_vm1, %v2398_v49  ;;  %v2836_v49 = vrot.slane %v5846_v5, 1 }
  0xa5   : > { %4763 = vmatmul.mubr.msk.f32.gmra.mxu1 %vm213_vm1, %v4090_v33  ;;  %4795 = vmatprep.mubr.msk.f32.mxu0 %vm213_vm1, %v4182_v50  ;;  %v2992_v33 = vrot.slane %v4195_v34, 2  ;;  %v2837_v50 = vrot.slane %v4197_v40, 1 }
  0xa6   : > { %4781 = vmatprep.mubr.msk.f32.mxu1 %vm213_vm1, %v5631_v11  ;;  %v2980_v11 = vrot.slane %v4187_v9, 2 }
  0xa7   : > { %v5945_v59 = vsel %vm363_vm2, %v2836_v49, %v2837_v50 }
  0xa8   : > { %4796 = vmatmul.mubr.msk.f32.vlgmr.msra.gmra.mxu0 %vm213_vm1, %v5782_v51  ;;  %v5874_v30 = vsel %vm522_vm3, %v2979_v4, %v2980_v11  ;;  %v4201_v4 = vld [vmem:[%s5204_s28 + $0x1d8] sm:$0x3] }
  0xa9   : > { %4782 = vmatmul.mubr.msk.f32.vlgmr.msra.gmra.mxu1 %vm213_vm1, %v5645_v22  ;;  %4822 = vmatpush3.msk.msra.mxu0 %vm238_vm0, %v4222_v47  ;;  %v2982_v22 = vrot.slane %v5804_v55, 2  ;;  %v2991_v47 = vrot.slane %v5831_v0, 2 }
  0xaa   : > { %4808 = vmatpush3.msk.msra.mxu1 %vm238_vm0, %v4212_v46  ;;  %4784 = vmatprep.mubr.msk.f32.mxu1 %vm213_vm1, %v5654_v25  ;;  %v2827_v25 = vrot.slane %v5811_v56, 1  ;;  %v2834_v46 = vrot.slane %v4195_v34, 1 }
  0xab   : > { %4798 = vmatprep.mubr.msk.f32.mxu0 %vm213_vm1, %v5785_v52  ;;  %4835 = vmatprep.subr.msk.mxu1 %vm238_vm0, %v5794_v53  ;;  %v5897_v41 = vsel %vm522_vm3, %v2982_v22, %v2983_v23  ;;  %v5934_v58 = vsel %vm522_vm3, %v2991_v47, %v2992_v33 }
  0xac   : > { %4849 = vmatprep.subr.msk.mxu0 %vm238_vm0, %v5799_v54  ;;  %4799 = vmatmul.mubr.msk.f32.gmra.mxu0 %vm213_vm1, %v5804_v55  ;;  %v5900_v42 = vsel %vm363_vm2, %v2827_v25, %v2828_v26 }
  0xad   : > { %4785 = vmatmul.mubr.msk.f32.gmra.mxu1 %vm213_vm1, %v5669_v28  ;;  %4801 = vmatprep.mubr.msk.f32.mxu0 %vm213_vm1, %v5811_v56  ;;  %v2986_v28 = vrot.slane %v4191_v21, 2 }
  0xae   : > { %4787 = vmatprep.mubr.msk.f32.mxu1 %vm213_vm1, %v5674_v31  ;;  %v2830_v31 = vrot.slane %v5828_v60, 1 }
  0xaf   : > { %v5903_v43 = vsel %vm522_vm3, %v2985_v27, %v2986_v28  ;;  %v3622_v28 = vrot.slane %v4201_v4, 1 }
  0xb0   : > { %4802 = vmatmul.mubr.msk.f32.gmra.mxu0 %vm213_vm1, %v5828_v60 }
  0xb1   : > { %4788 = vmatmul.mubr.msk.f32.gmra.mxu1 %vm213_vm1, %v5685_v32  ;;  %4804 = vmatprep.mubr.msk.f32.mxu0 %vm213_vm1, %v5831_v0  ;;  %v2831_v32 = vrot.slane %v4193_v24, 1 }
  0xb2   : > { %4790 = vmatprep.mubr.msk.f32.mxu1 %vm213_vm1, %v5731_v45  ;;  %v2833_v45 = vrot.slane %v5831_v0, 1 }
  0xb3   : > { %v5919_v44 = vsel %vm363_vm2, %v2830_v31, %v2831_v32 }
  0xb4   : > { %4805 = vmatmul.mubr.msk.f32.gmra.mxu0 %vm213_vm1, %v5846_v5  ;;  %v5931_v57 = vsel %vm363_vm2, %v2833_v45, %v2834_v46 }
  0xb5   : > { %4791 = vmatmul.mubr.msk.f32.gmra.mxu1 %vm213_vm1, %v2521_v10  ;;  %4823 = vmatprep.mubr.msk.f32.mxu0 %vm213_vm1, %v2975_v18 }
  0xb6   : > { %4809 = vmatprep.mubr.msk.f32.mxu1 %vm213_vm1, %v2817_v17 }
  0xb8   : > { %4824 = vmatmul.mubr.msk.f32.vlgmr.msra.gmra.mxu0 %vm213_vm1, %v5857_v15 }
  0xb9   : > { %4810 = vmatmul.mubr.msk.f32.vlgmr.msra.gmra.mxu1 %vm213_vm1, %v5854_v12  ;;  %4850 = vmatpush3.msk.msra.mxu0 %vm238_vm0, %v5799_v54  ;;  %v2995_v54 = vrot.slane %v4197_v40, 2 }
  0xba   : > { %4836 = vmatpush3.msk.msra.mxu1 %vm238_vm0, %v5794_v53  ;;  %4812 = vmatprep.mubr.msk.f32.mxu1 %vm213_vm1, %v5871_v29  ;;  %v2994_v53 = vrot.slane %v5846_v5, 2 }
  0xbb   : > { %4826 = vmatprep.mubr.msk.f32.mxu0 %vm213_vm1, %v5874_v30  ;;  %4863 = vmatprep.subr.msk.mxu1 %vm238_vm0, %v4252_v38 }
  0xbc   : > { %4877 = vmatprep.subr.msk.mxu0 %vm238_vm0, %v4262_v39  ;;  %4827 = vmatmul.mubr.msk.f32.gmra.mxu0 %vm213_vm1, %v5897_v41  ;;  %v5948_v61 = vsel %vm522_vm3, %v2994_v53, %v2995_v54 }
  0xbd   : > { %4813 = vmatmul.mubr.msk.f32.gmra.mxu1 %vm213_vm1, %v5883_v35  ;;  %4829 = vmatprep.mubr.msk.f32.mxu0 %vm213_vm1, %v5903_v43 }
  0xbe   : > { %4815 = vmatprep.mubr.msk.f32.mxu1 %vm213_vm1, %v5900_v42 }
  0xc0   : > { %4830 = vmatmul.mubr.msk.f32.gmra.mxu0 %vm213_vm1, %v5922_v48 }
  0xc1   : > { %4816 = vmatmul.mubr.msk.f32.gmra.mxu1 %vm213_vm1, %v5919_v44  ;;  %4832 = vmatprep.mubr.msk.f32.mxu0 %vm213_vm1, %v5934_v58 }
  0xc2   : > { %4818 = vmatprep.mubr.msk.f32.mxu1 %vm213_vm1, %v5931_v57 }
  0xc4   : > { %4833 = vmatmul.mubr.msk.f32.gmra.mxu0 %vm213_vm1, %v5948_v61 }
  0xc5   : > { %4819 = vmatmul.mubr.msk.f32.gmra.mxu1 %vm213_vm1, %v5945_v59  ;;  %4851 = vmatprep.mubr.msk.f32.mxu0 %vm213_vm1, %v5854_v12 }
  0xc6   : > { %4837 = vmatprep.mubr.msk.f32.mxu1 %vm213_vm1, %v5782_v51  ;;  %v4198_v51 = vld [vmem:[%s5204_s28 + $0x1c0] sm:$0xff] }
  0xc7   : > { %v3253_v2 = vrot.slane %v4198_v51, 1 }
  0xc8   : > { %4852 = vmatmul.mubr.msk.f32.vlgmr.msra.gmra.mxu0 %vm213_vm1, %v5871_v29 }
  0xc9   : > { %4838 = vmatmul.mubr.msk.f32.vlgmr.msra.gmra.mxu1 %vm213_vm1, %v5785_v52  ;;  %4878 = vmatpush3.msk.msra.mxu0 %vm238_vm0, %v4262_v39  ;;  %v5995_v6 = vsel %vm363_vm2, %v3253_v2, %v3254_v3 }
  0xca   : > { %4864 = vmatpush3.msk.msra.mxu1 %vm238_vm0, %v4252_v38  ;;  %4840 = vmatprep.mubr.msk.f32.mxu1 %vm213_vm1, %v5804_v55 }
  0xcb   : > { %4854 = vmatprep.mubr.msk.f32.mxu0 %vm213_vm1, %v5883_v35  ;;  %4891 = vmatprep.subr.msk.mxu1 %vm238_vm0, %v4272_v62 }
  0xcc   : > { %4905 = vmatprep.subr.msk.mxu0 %vm238_vm0, %v4282_v63  ;;  %4855 = vmatmul.mubr.msk.f32.gmra.mxu0 %vm213_vm1, %v5900_v42 }
  0xcd   : > { %4841 = vmatmul.mubr.msk.f32.gmra.mxu1 %vm213_vm1, %v5811_v56  ;;  %4857 = vmatprep.mubr.msk.f32.mxu0 %vm213_vm1, %v5919_v44 }
  0xce   : > { %4843 = vmatprep.mubr.msk.f32.mxu1 %vm213_vm1, %v5828_v60 }
  0xd0   : > { %4858 = vmatmul.mubr.msk.f32.gmra.mxu0 %vm213_vm1, %v5931_v57 }
  0xd1   : > { %4844 = vmatmul.mubr.msk.f32.gmra.mxu1 %vm213_vm1, %v5831_v0  ;;  %4860 = vmatprep.mubr.msk.f32.mxu0 %vm213_vm1, %v5945_v59 }
  0xd2   : > { %4846 = vmatprep.mubr.msk.f32.mxu1 %vm213_vm1, %v5846_v5 }
  0xd4   : > { %4861 = vmatmul.mubr.msk.f32.gmra.mxu0 %vm213_vm1, %v5995_v6 }
  0xd5   : > { %4847 = vmatmul.mubr.msk.f32.gmra.mxu1 %vm213_vm1, %v4198_v51  ;;  %4879 = vmatprep.mubr.msk.f32.mxu0 %vm213_vm1, %v5785_v52  ;;  %v3376_v52 = vrot.slane %v4198_v51, 2 }
  0xd6   : > { %4865 = vmatprep.mubr.msk.f32.mxu1 %vm213_vm1, %v5857_v15 }
  0xd8   : > { %4880 = vmatmul.mubr.msk.f32.vlgmr.msra.gmra.mxu0 %vm213_vm1, %v5804_v55  ;;  %v3377_v55 = vrot.slane %v4199_v1, 2 }
  0xd9   : > { %4866 = vmatmul.mubr.msk.f32.vlgmr.msra.gmra.mxu1 %vm213_vm1, %v5874_v30  ;;  %4906 = vmatpush3.msk.msra.mxu0 %vm238_vm0, %v4282_v63 }
  0xda   : > { %4892 = vmatpush3.msk.msra.mxu1 %vm238_vm0, %v4272_v62  ;;  %4868 = vmatprep.mubr.msk.f32.mxu1 %vm213_vm1, %v5897_v41 }
  0xdb   : > { %4882 = vmatprep.mubr.msk.f32.mxu0 %vm213_vm1, %v5811_v56  ;;  %v3378_v56 = vsel %vm522_vm3, %v3376_v52, %v3377_v55 }
  0xdc   : > { %4883 = vmatmul.mubr.msk.f32.gmra.mxu0 %vm213_vm1, %v5828_v60  ;;  %v4200_v60 = vld [vmem:[%s5204_s28 + $0x1d0] sm:$0xff]  ;;  %s175_s28 = sand.u32 1, %s5063_s13  }
  0xdd   : > { %4869 = vmatmul.mubr.msk.f32.gmra.mxu1 %vm213_vm1, %v5903_v43  ;;  %4885 = vmatprep.mubr.msk.f32.mxu0 %vm213_vm1, %v5831_v0  ;;  %v3621_v24 = vrot.slane %v4200_v60, 1  ;;  %v3744_v25 = vrot.slane %v4200_v60, 2  ;;  %s3980_s24 = sshll.u32 %s175_s28, 6  ;;  %s6246_s9 = scalar_lea.sflag [#allocation3], %s175_s28 }
  0xde   : > { %4871 = vmatprep.mubr.msk.f32.mxu1 %vm213_vm1, %v5922_v48  ;;  %s6223_s27 = scalar_lea.vmem [#allocation2], %s3980_s24 }
  0xdf   : > { %s3891_s16 = sshll.u32 %s6223_s27, 4  ;;  %s6240_s16 = int_to_ptr.vmem [resolvable:$true] %s3891_s16 }
  0xe0   : > { %v4545_v7 = vpop.f32.mrf.mxu0  ;;  %4886 = vmatmul.mubr.msk.f32.gmra.mxu0 %vm213_vm1, %v5846_v5  ;;  %v3982_v5 = vld [vmem:[%s6299_s2] ss:$0 sm:$0xff]  ;;  %s4995_s10 = scalar_lea.vmem %s6240_s16, 1024  ;;  %p5002_p2 = scmp.lt.s32.totalorder %s6240_s16, %s5000_s20 }
  0xe1   : > { %v4551_v8 = vpop.f32.mrf.mxu1  ;;  %4872 = vmatmul.mubr.msk.f32.gmra.mxu1 %vm213_vm1, %v5934_v58  ;;  %4888 = vmatprep.mubr.msk.f32.mxu0 %vm213_vm1, %v4198_v51  ;;  %v348_v19 = vadd.f32 %v4545_v7, %v3982_v5  ;;  %p4996_p13 = scmp.ne.s32.totalorder %s6240_s16, %s4995_s10  ;;  %p5003_p4 = scmp.lt.s32.totalorder %s5001_s21, %s4995_s10 }
  0xe2   : > { %4874 = vmatprep.mubr.msk.f32.mxu1 %vm213_vm1, %v5948_v61  ;;  %v308_v9 = vpop.f32.mrf.mxu0  ;;  %v352_v36 = vadd.f32 %v4551_v8, %v3982_v5 }
  0xe3   : > { %v328_v10 = vpop.f32.mrf.mxu1  ;;  %v347_v12 = vadd.f32 %v3982_v5, %v308_v9  ;;  %p4997_p0 = pnand %p4996_p13, %p5163_p3  ;;  %p5004_p5 = por %p5003_p4, %p5002_p2 }
  0xe4   : > { %v4548_v0 = vpop.f32.mrf.mxu0  ;;  %4889 = vmatmul.mubr.msk.f32.gmra.mxu0 %vm213_vm1, %v4200_v60  ;;  %v351_v45 = vadd.f32 %v3982_v5, %v328_v10 }
  0xe5   : > { %v4554_v13 = vpop.f32.mrf.mxu1  ;;  %4875 = vmatmul.mubr.msk.f32.gmra.mxu1 %vm213_vm1, %v3378_v56  ;;  %4907 = vmatprep.mubr.msk.f32.mxu0 %vm213_vm1, %v5874_v30  ;;  %v350_v16 = vadd.f32 %v4548_v0, %v3982_v5  ;;  %p4998_p1 = pneg %p4997_p0 }
  0xe6   : > { %4893 = vmatprep.mubr.msk.f32.mxu1 %vm213_vm1, %v5871_v29  ;;  %v318_v17 = vpop.f32.mrf.mxu0  ;;  %v3745_v29 = vrot.slane %v4201_v4, 2 }
  0xe7   : > { %v338_v18 = vpop.f32.mrf.mxu1  ;;  %v349_v30 = vadd.f32 %v3982_v5, %v318_v17  ;;  %p5005_p6 = pnand %p5004_p5, %p4998_p1 }
  0xe8   : > { %v4573_v21 = vpop.f32.mrf.mxu0  ;;  %4908 = vmatmul.mubr.msk.f32.vlgmr.msra.gmra.mxu0 %vm213_vm1, %v5897_v41  ;;  %v353_v54 = vadd.f32 %v3982_v5, %v338_v18 }
  0xe9   : > { %v4559_v20 = vpop.f32.mrf.mxu1  ;;  %4894 = vmatmul.mubr.msk.f32.vlgmr.msra.gmra.mxu1 %vm213_vm1, %v5883_v35  ;;  %4910 = vmatprep.mubr.msk.f32.mxu0 %vm213_vm1, %v5903_v43  ;;  %v3746_v43 = vsel %vm522_vm3, %v3744_v25, %v3745_v29 }
  0xea   : > { %v515_v15 = vadd.f32 %v4559_v20, %v348_v19  ;;  %4896 = vmatprep.mubr.msk.f32.mxu1 %vm213_vm1, %v5900_v42  ;;  %v634_v14 = vpop.f32.mrf.mxu0  ;;  %v3623_v42 = vsel %vm363_vm2, %v3621_v24, %v3622_v28 }
  0xeb   : > { %v475_v11 = vpop.f32.mrf.mxu1 }
  0xec   : > { %v674_v22 = vadd.f32 %v4573_v21, %v515_v15  ;;  %v514_v23 = vadd.f32 %v475_v11, %v347_v12  ;;  %v4576_v27 = vpop.f32.mrf.mxu0  ;;  %4911 = vmatmul.mubr.msk.f32.gmra.mxu0 %vm213_vm1, %v5922_v48 }
  0xed   : > { %v4562_v26 = vpop.f32.mrf.mxu1  ;;  %4897 = vmatmul.mubr.msk.f32.gmra.mxu1 %vm213_vm1, %v5919_v44  ;;  %4913 = vmatprep.mubr.msk.f32.mxu0 %vm213_vm1, %v5934_v58  ;;  %v354_v44 = vadd.f32 %v4554_v13, %v3982_v5 }
  0xee   : > { %v673_v31 = vadd.f32 %v634_v14, %v514_v23  ;;  %v517_v32 = vadd.f32 %v4562_v26, %v350_v16  ;;  %4899 = vmatprep.mubr.msk.f32.mxu1 %vm213_vm1, %v5931_v57  ;;  %v644_v35 = vpop.f32.mrf.mxu0 }
  0xef   : > { %v485_v34 = vpop.f32.mrf.mxu1 }
  0xf0   : > { %v676_v37 = vadd.f32 %v4576_v27, %v517_v32  ;;  %v516_v38 = vadd.f32 %v485_v34, %v349_v30  ;;  %v4579_v41 = vpop.f32.mrf.mxu0  ;;  %4914 = vmatmul.mubr.msk.f32.gmra.mxu0 %vm213_vm1, %v5948_v61 }
  0xf1   : > { %v4565_v39 = vpop.f32.mrf.mxu1  ;;  %4900 = vmatmul.mubr.msk.f32.gmra.mxu1 %vm213_vm1, %v5945_v59  ;;  %4916 = vmatprep.mubr.msk.f32.mxu0 %vm213_vm1, %v3378_v56 }
  0xf2   : > { %v675_v46 = vadd.f32 %v644_v35, %v516_v38  ;;  %v519_v47 = vadd.f32 %v4565_v39, %v352_v36  ;;  %4902 = vmatprep.mubr.msk.f32.mxu1 %vm213_vm1, %v5995_v6  ;;  %v654_v40 = vpop.f32.mrf.mxu0 }
  0xf3   : > { %v495_v33 = vpop.f32.mrf.mxu1 }
  0xf4   : > { %v678_v48 = vadd.f32 %v4579_v41, %v519_v47  ;;  %v518_v49 = vadd.f32 %v495_v33, %v351_v45  ;;  %v4582_v53 = vpop.f32.mrf.mxu0  ;;  %4917 = vmatmul.mubr.msk.f32.gmra.mxu0 %vm213_vm1, %v3746_v43 }
  0xf5   : > { %v4568_v50 = vpop.f32.mrf.mxu1  ;;  %4903 = vmatmul.mubr.msk.f32.gmra.mxu1 %vm213_vm1, %v3623_v42 }
  0xf6   : > { %v677_v57 = vadd.f32 %v654_v40, %v518_v49  ;;  %v521_v58 = vadd.f32 %v4568_v50, %v354_v44  ;;  %v664_v61 = vpop.f32.mrf.mxu0 }
  0xf7   : > { %v505_v59 = vpop.f32.mrf.mxu1 }
  0xf8   : > { %v680_v62 = vadd.f32 %v4582_v53, %v521_v58  ;;  %v520_v63 = vadd.f32 %v505_v59, %v353_v54  ;;  %v4601_v1 = vpop.f32.mrf.mxu0 }
  0xf9   : > { %v4587_v51 = vpop.f32.mrf.mxu1 }
  0xfa   : > { %v679_v2 = vadd.f32 %v664_v61, %v520_v63  ;;  %v795_v3 = vadd.f32 %v4587_v51, %v674_v22  ;;  %v879_v52 = vpop.f32.mrf.mxu0 }
  0xfb   : > { %v755_v6 = vpop.f32.mrf.mxu1 }
  0xfc   : > { %v919_v55 = vadd.f32 %v4601_v1, %v795_v3  ;;  %v794_v7 = vadd.f32 %v755_v6, %v673_v31  ;;  %v4604_v56 = vpop.f32.mrf.mxu0 }
  0xfd   : > { %v4590_v8 = vpop.f32.mrf.mxu1 }
  0xfe   : > { %v918_v60 = vadd.f32 %v879_v52, %v794_v7  ;;  %v797_v9 = vadd.f32 %v4590_v8, %v676_v37  ;;  %v889_v0 = vpop.f32.mrf.mxu0 }
  0xff   : > { %v765_v10 = vpop.f32.mrf.mxu1 }
 0x100   : > { %v921_v13 = vadd.f32 %v4604_v56, %v797_v9  ;;  %v796_v5 = vadd.f32 %v765_v10, %v675_v46  ;;  %v4607_v18 = vpop.f32.mrf.mxu0 }
 0x101   : > { %v4593_v17 = vpop.f32.mrf.mxu1 }
 0x102   : > { %v920_v19 = vadd.f32 %v889_v0, %v796_v5  ;;  %v799_v20 = vadd.f32 %v4593_v17, %v678_v48  ;;  %v899_v12 = vpop.f32.mrf.mxu0 }
 0x103   : > { %v775_v21 = vpop.f32.mrf.mxu1 }
 0x104   : > { %v923_v15 = vadd.f32 %v4607_v18, %v799_v20  ;;  %v798_v4 = vadd.f32 %v775_v21, %v677_v57  ;;  %v4610_v14 = vpop.f32.mrf.mxu0 }
 0x105   : > { %v4596_v11 = vpop.f32.mrf.mxu1 }
 0x106   : > { %v922_v16 = vadd.f32 %v899_v12, %v798_v4  ;;  %v801_v22 = vadd.f32 %v4596_v11, %v680_v62  ;;  %v909_v24 = vpop.f32.mrf.mxu0 }
 0x107   : > { %v785_v23 = vpop.f32.mrf.mxu1 }
 0x108   : > { %v925_v25 = vadd.f32 %v4610_v14, %v801_v22  ;;  %v800_v26 = vadd.f32 %v785_v23, %v679_v2  ;;  %v4629_v28 = vpop.f32.mrf.mxu0 }
 0x109   : > { %v4615_v27 = vpop.f32.mrf.mxu1 }
 0x10a   : > { %v924_v29 = vadd.f32 %v909_v24, %v800_v26  ;;  %v1042_v30 = vadd.f32 %v4615_v27, %v919_v55  ;;  %v1123_v32 = vpop.f32.mrf.mxu0 }
 0x10b   : > { %v1002_v31 = vpop.f32.mrf.mxu1 }
 0x10c   : > { %v1163_v34 = vadd.f32 %v4629_v28, %v1042_v30  ;;  %v1041_v35 = vadd.f32 %v1002_v31, %v918_v60  ;;  %v4632_v37 = vpop.f32.mrf.mxu0 }
 0x10d   : > { %v4618_v36 = vpop.f32.mrf.mxu1 }
 0x10e   : > { %v1162_v38 = vadd.f32 %v1123_v32, %v1041_v35  ;;  %v1044_v39 = vadd.f32 %v4618_v36, %v921_v13  ;;  %v1133_v42 = vpop.f32.mrf.mxu0 }
 0x10f   : > { %v1012_v41 = vpop.f32.mrf.mxu1 }
 0x110   : > { %v1165_v43 = vadd.f32 %v4632_v37, %v1044_v39  ;;  %v1043_v45 = vadd.f32 %v1012_v41, %v920_v19  ;;  %v4635_v47 = vpop.f32.mrf.mxu0 }
 0x111   : > { %v4621_v46 = vpop.f32.mrf.mxu1 }
 0x112   : > { %v1164_v33 = vadd.f32 %v1133_v42, %v1043_v45  ;;  %v1046_v40 = vadd.f32 %v4621_v46, %v923_v15  ;;  %v1143_v48 = vpop.f32.mrf.mxu0 }
 0x113   : > { %v1022_v44 = vpop.f32.mrf.mxu1 }
 0x114   : > { %v1167_v49 = vadd.f32 %v4635_v47, %v1046_v40  ;;  %v1045_v50 = vadd.f32 %v1022_v44, %v922_v16  ;;  %v4638_v54 = vpop.f32.mrf.mxu0 }
 0x115   : > { %v4624_v53 = vpop.f32.mrf.mxu1 }
 0x116   : > { %v1166_v57 = vadd.f32 %v1143_v48, %v1045_v50  ;;  %v1048_v58 = vadd.f32 %v4624_v53, %v925_v25  ;;  %v1153_v61 = vpop.f32.mrf.mxu0 }
 0x117   : > { %v1032_v59 = vpop.f32.mrf.mxu1 }
 0x118   : > { %v1169_v62 = vadd.f32 %v4638_v54, %v1048_v58  ;;  %v1047_v63 = vadd.f32 %v1032_v59, %v924_v29  ;;  %v4657_v1 = vpop.f32.mrf.mxu0 }
 0x119   : > { %v4643_v51 = vpop.f32.mrf.mxu1 }
 0x11a   : > { %v1168_v2 = vadd.f32 %v1153_v61, %v1047_v63  ;;  %v1287_v3 = vadd.f32 %v4643_v51, %v1163_v34  ;;  %v1370_v52 = vpop.f32.mrf.mxu0 }
 0x11b   : > { %v1247_v6 = vpop.f32.mrf.mxu1 }
 0x11c   : > { %v1410_v55 = vadd.f32 %v4657_v1, %v1287_v3  ;;  %v1286_v7 = vadd.f32 %v1247_v6, %v1162_v38  ;;  %v4660_v56 = vpop.f32.mrf.mxu0 }
 0x11d   : > { %v4646_v8 = vpop.f32.mrf.mxu1 }
 0x11e   : > { %v1409_v60 = vadd.f32 %v1370_v52, %v1286_v7  ;;  %v1289_v9 = vadd.f32 %v4646_v8, %v1165_v43  ;;  %v1380_v0 = vpop.f32.mrf.mxu0 }
 0x11f   : > { %v1257_v10 = vpop.f32.mrf.mxu1 }
 0x120   : > { %v1412_v13 = vadd.f32 %v4660_v56, %v1289_v9  ;;  %v1288_v5 = vadd.f32 %v1257_v10, %v1164_v33  ;;  %v4663_v18 = vpop.f32.mrf.mxu0 }
 0x121   : > { %v4649_v17 = vpop.f32.mrf.mxu1 }
 0x122   : > { %v1411_v19 = vadd.f32 %v1380_v0, %v1288_v5  ;;  %v1291_v20 = vadd.f32 %v4649_v17, %v1167_v49  ;;  %v1390_v12 = vpop.f32.mrf.mxu0 }
 0x123   : > { %v1267_v21 = vpop.f32.mrf.mxu1 }
 0x124   : > { %v1414_v15 = vadd.f32 %v4663_v18, %v1291_v20  ;;  %v1290_v4 = vadd.f32 %v1267_v21, %v1166_v57  ;;  %v4666_v14 = vpop.f32.mrf.mxu0 }
 0x125   : > { %v4652_v11 = vpop.f32.mrf.mxu1 }
 0x126   : > { %v1413_v16 = vadd.f32 %v1390_v12, %v1290_v4  ;;  %v1293_v22 = vadd.f32 %v4652_v11, %v1169_v62  ;;  %v1400_v24 = vpop.f32.mrf.mxu0 }
 0x127   : > { %v1277_v23 = vpop.f32.mrf.mxu1 }
 0x128   : > { %v1416_v25 = vadd.f32 %v4666_v14, %v1293_v22  ;;  %v1292_v26 = vadd.f32 %v1277_v23, %v1168_v2  ;;  %v4685_v28 = vpop.f32.mrf.mxu0 }
 0x129   : > { %v4671_v27 = vpop.f32.mrf.mxu1 }
 0x12a   : > { %v1415_v29 = vadd.f32 %v1400_v24, %v1292_v26  ;;  %v1575_v30 = vadd.f32 %v4671_v27, %v1410_v55  ;;  %v1701_v32 = vpop.f32.mrf.mxu0 }
 0x12b   : > { %v1535_v31 = vpop.f32.mrf.mxu1 }
 0x12c   : > { %v1741_v34 = vadd.f32 %v4685_v28, %v1575_v30  ;;  %v1574_v35 = vadd.f32 %v1535_v31, %v1409_v60  ;;  %v4688_v37 = vpop.f32.mrf.mxu0 }
 0x12d   : > { %v4674_v36 = vpop.f32.mrf.mxu1 }
 0x12e   : > { %v1740_v38 = vadd.f32 %v1701_v32, %v1574_v35  ;;  %v1577_v39 = vadd.f32 %v4674_v36, %v1412_v13  ;;  %v1711_v42 = vpop.f32.mrf.mxu0 }
 0x12f   : > { %v1545_v41 = vpop.f32.mrf.mxu1 }
 0x130   : > { %v1743_v43 = vadd.f32 %v4688_v37, %v1577_v39  ;;  %v1576_v45 = vadd.f32 %v1545_v41, %v1411_v19  ;;  %v4691_v47 = vpop.f32.mrf.mxu0 }
 0x131   : > { %v4677_v46 = vpop.f32.mrf.mxu1 }
 0x132   : > { %v1742_v33 = vadd.f32 %v1711_v42, %v1576_v45  ;;  %v1579_v40 = vadd.f32 %v4677_v46, %v1414_v15  ;;  %v1721_v48 = vpop.f32.mrf.mxu0 }
 0x133   : > { %v1555_v44 = vpop.f32.mrf.mxu1 }
 0x134   : > { %v1745_v49 = vadd.f32 %v4691_v47, %v1579_v40  ;;  %v1578_v50 = vadd.f32 %v1555_v44, %v1413_v16  ;;  %v4694_v54 = vpop.f32.mrf.mxu0 }
 0x135   : > { %v4680_v53 = vpop.f32.mrf.mxu1 }
 0x136   : > { %v1744_v57 = vadd.f32 %v1721_v48, %v1578_v50  ;;  %v1581_v58 = vadd.f32 %v4680_v53, %v1416_v25  ;;  %v1731_v61 = vpop.f32.mrf.mxu0 }
 0x137   : > { %v1565_v59 = vpop.f32.mrf.mxu1 }
 0x138   : > { %v1747_v62 = vadd.f32 %v4694_v54, %v1581_v58  ;;  %v1580_v63 = vadd.f32 %v1565_v59, %v1415_v29  ;;  %v4713_v1 = vpop.f32.mrf.mxu0 }
 0x139   : > { %v4699_v51 = vpop.f32.mrf.mxu1 }
 0x13a   : > { %v1746_v2 = vadd.f32 %v1731_v61, %v1580_v63  ;;  %v1899_v3 = vadd.f32 %v4699_v51, %v1741_v34  ;;  %v1980_v52 = vpop.f32.mrf.mxu0 }
 0x13b   : > { %v1859_v6 = vpop.f32.mrf.mxu1 }
 0x13c   : > { %v2020_v55 = vadd.f32 %v4713_v1, %v1899_v3  ;;  %v1898_v7 = vadd.f32 %v1859_v6, %v1740_v38  ;;  %v4716_v56 = vpop.f32.mrf.mxu0 }
 0x13d   : > { %v4702_v8 = vpop.f32.mrf.mxu1 }
 0x13e   : > { %v2019_v60 = vadd.f32 %v1980_v52, %v1898_v7  ;;  %v1901_v9 = vadd.f32 %v4702_v8, %v1743_v43  ;;  %v1990_v0 = vpop.f32.mrf.mxu0 }
 0x13f   : > { %v1869_v10 = vpop.f32.mrf.mxu1 }
 0x140   : > { %v2022_v13 = vadd.f32 %v4716_v56, %v1901_v9  ;;  %v1900_v5 = vadd.f32 %v1869_v10, %v1742_v33  ;;  %v4719_v18 = vpop.f32.mrf.mxu0 }
 0x141   : > { %v4705_v17 = vpop.f32.mrf.mxu1 }
 0x142   : > { %v2021_v19 = vadd.f32 %v1990_v0, %v1900_v5  ;;  %v1903_v20 = vadd.f32 %v4705_v17, %v1745_v49  ;;  %v2000_v12 = vpop.f32.mrf.mxu0 }
 0x143   : > { %v1879_v21 = vpop.f32.mrf.mxu1 }
 0x144   : > { %v2024_v15 = vadd.f32 %v4719_v18, %v1903_v20  ;;  %v1902_v4 = vadd.f32 %v1879_v21, %v1744_v57  ;;  %v4722_v14 = vpop.f32.mrf.mxu0 }
 0x145   : > { %v4708_v11 = vpop.f32.mrf.mxu1 }
 0x146   : > { %v2023_v16 = vadd.f32 %v2000_v12, %v1902_v4  ;;  %v1905_v22 = vadd.f32 %v4708_v11, %v1747_v62  ;;  %v2010_v24 = vpop.f32.mrf.mxu0 }
 0x147   : > { %v1889_v23 = vpop.f32.mrf.mxu1 }
 0x148   : > { %v2026_v25 = vadd.f32 %v4722_v14, %v1905_v22  ;;  %v1904_v26 = vadd.f32 %v1889_v23, %v1746_v2  ;;  %v4741_v28 = vpop.f32.mrf.mxu0 }
 0x149   : > { %v4727_v27 = vpop.f32.mrf.mxu1 }
 0x14a   : > { %v2025_v29 = vadd.f32 %v2010_v24, %v1904_v26  ;;  %v2144_v30 = vadd.f32 %v4727_v27, %v2020_v55  ;;  %v2227_v32 = vpop.f32.mrf.mxu0 }
 0x14b   : > { %v2104_v31 = vpop.f32.mrf.mxu1 }
 0x14c   : > { %v6068_v34 = vadd.f32 %v4741_v28, %v2144_v30  ;;  %v2143_v35 = vadd.f32 %v2104_v31, %v2019_v60  ;;  %v4744_v37 = vpop.f32.mrf.mxu0 }
 0x14d   : > { %v4730_v36 = vpop.f32.mrf.mxu1 }
 0x14e   : > { %v6070_v38 = vadd.f32 %v2227_v32, %v2143_v35  ;;  %v2146_v39 = vadd.f32 %v4730_v36, %v2022_v13  ;;  %v2237_v42 = vpop.f32.mrf.mxu0 }
 0x14f   : > { %v2114_v41 = vpop.f32.mrf.mxu1 }
 0x150   : > { %v6072_v43 = vadd.f32 %v4744_v37, %v2146_v39  ;;  %v2145_v45 = vadd.f32 %v2114_v41, %v2021_v19  ;;  %v4747_v47 = vpop.f32.mrf.mxu0 }
 0x151   : > { %v4733_v46 = vpop.f32.mrf.mxu1 }
 0x152   : > { %v6074_v33 = vadd.f32 %v2237_v42, %v2145_v45  ;;  %v2148_v40 = vadd.f32 %v4733_v46, %v2024_v15  ;;  %v2247_v48 = vpop.f32.mrf.mxu0 }
 0x153   : > { %v2124_v44 = vpop.f32.mrf.mxu1 }
 0x154   : > { %v6076_v49 = vadd.f32 %v4747_v47, %v2148_v40  ;;  %v2147_v50 = vadd.f32 %v2124_v44, %v2023_v16  ;;  %v4750_v54 = vpop.f32.mrf.mxu0 }
 0x155   : > { %v4736_v53 = vpop.f32.mrf.mxu1 }
 0x156   : > { %v6078_v57 = vadd.f32 %v2247_v48, %v2147_v50  ;;  %v2150_v58 = vadd.f32 %v4736_v53, %v2026_v25  ;;  %v2257_v61 = vpop.f32.mrf.mxu0 }
 0x157   : > { %v2134_v59 = vpop.f32.mrf.mxu1 }
 0x158   : > { %v6080_v62 = vadd.f32 %v4750_v54, %v2150_v58  ;;  %v2149_v63 = vadd.f32 %v2134_v59, %v2025_v29  ;;  %v4769_v1 = vpop.f32.mrf.mxu0 }
 0x159   : > { %v4755_v51 = vpop.f32.mrf.mxu1 }
 0x15a   : > { %v6082_v2 = vadd.f32 %v2257_v61, %v2149_v63  ;;  %v2472_v6 = vpop.f32.mrf.mxu0  ;;  %v2388_v58 = vadd.f32 %v4755_v51, %v6068_v34 }
 0x15b   : > { %v2348_v3 = vpop.f32.mrf.mxu1 }
 0x15c   : > { %v4772_v55 = vpop.f32.mrf.mxu0  ;;  %v2387_v63 = vadd.f32 %v2348_v3, %v6070_v38 }
 0x15d   : > { %v4758_v52 = vpop.f32.mrf.mxu1 }
 0x15e   : > { %v6084_v8 = vpop.f32.mrf.mxu0 }
 0x15f   : > { %v2358_v7 = vpop.f32.mrf.mxu1 }
 0x160   : > { %v6086_v60 = vpop.f32.mrf.mxu0  ;;  %v2389_v34 = vadd.f32 %v2358_v7, %v6074_v33 }
 0x161   : > { %v4761_v56 = vpop.f32.mrf.mxu1 }
 0x162   : > { %v6088_v10 = vpop.f32.mrf.mxu0  ;;  %v2392_v3 = vadd.f32 %v4761_v56, %v6076_v49 }
 0x163   : > { %v2368_v9 = vpop.f32.mrf.mxu1 }
 0x164   : > { %v6092_v13 = vpop.f32.mrf.mxu0  ;;  %v2516_v49 = vadd.f32 %v6086_v60, %v2392_v3 }
 0x165   : > { %v6090_v0 = vpop.f32.mrf.mxu1 }
 0x166   : > { %v6096_v17 = vpop.f32.mrf.mxu0  ;;  %v2394_v33 = vadd.f32 %v6090_v0, %v6080_v62 }
 0x167   : > { %v6094_v5 = vpop.f32.mrf.mxu1 }
 0x168   : > { %v4797_v19 = vpop.f32.mrf.mxu0 }
 0x169   : > { %v4783_v18 = vpop.f32.mrf.mxu1 }
 0x16a   : > { %v2760_v21 = vpop.f32.mrf.mxu0 }
 0x16b   : > { %v2595_v20 = vpop.f32.mrf.mxu1 }
 0x16c   : > { %v6098_v15 = vpop.f32.mrf.mxu0 }
 0x16d   : > { %v4786_v12 = vpop.f32.mrf.mxu1 }
 0x16e   : > { %v6100_v11 = vpop.f32.mrf.mxu0 }
 0x16f   : > { %v2605_v4 = vpop.f32.mrf.mxu1 }
 0x170   : > { %v6104_v16 = vpop.f32.mrf.mxu0 }
 0x171   : > { %v6102_v14 = vpop.f32.mrf.mxu1 }
 0x172   : > { %v6108_v23 = vpop.f32.mrf.mxu0  ;;  %v2639_v62 = vadd.f32 %v6102_v14, %v2516_v49 }
 0x173   : > { %v6106_v22 = vpop.f32.mrf.mxu1 }
 0x174   : > { %v6112_v25 = vpop.f32.mrf.mxu0 }
 0x175   : > { %v6110_v24 = vpop.f32.mrf.mxu1 }
 0x176   : > { %v6116_v27 = vpop.f32.mrf.mxu0 }
 0x177   : > { %v6114_v26 = vpop.f32.mrf.mxu1  ;;  %6303 = vst [vmem:[#allocation5_spill] sm:$0xff] %v6116_v27 }
 0x178   : > { %v4825_v29 = vpop.f32.mrf.mxu0 }
 0x179   : > { %v4811_v28 = vpop.f32.mrf.mxu1 }
 0x17a   : > { %v6118_v31 = vpop.f32.mrf.mxu0 }
 0x17b   : > { %v2926_v30 = vpop.f32.mrf.mxu1 }
 0x17c   : > { %v6120_v35 = vpop.f32.mrf.mxu0 }
 0x17d   : > { %v4814_v32 = vpop.f32.mrf.mxu1 }
 0x17e   : > { %v6124_v37 = vpop.f32.mrf.mxu0 }
 0x17f   : > { %v6122_v36 = vpop.f32.mrf.mxu1 }
 0x180   : > { %v6128_v41 = vpop.f32.mrf.mxu0 }
 0x181   : > { %v6126_v39 = vpop.f32.mrf.mxu1  ;;  %6304 = vst [vmem:[#allocation6_spill] sm:$0xff] %v6128_v41 }
 0x182   : > { %v6132_v45 = vpop.f32.mrf.mxu0 }
 0x183   : > { %v6130_v42 = vpop.f32.mrf.mxu1  ;;  %6305 = vst [vmem:[#allocation7_spill] sm:$0xff] %v6132_v45 }
 0x184   : > { %v6136_v47 = vpop.f32.mrf.mxu0 }
 0x185   : > { %v6134_v46 = vpop.f32.mrf.mxu1  ;;  %6307 = vst [vmem:[#allocation9_spill] sm:$0xff] %v6136_v47 }
 0x186   : > { %6306 = vst [vmem:[#allocation8_spill] sm:$0xff] %v6134_v46  ;;  %v6140_v44 = vpop.f32.mrf.mxu0 }
 0x187   : > { %v6138_v40 = vpop.f32.mrf.mxu1  ;;  %6309 = vst [vmem:[#allocation11_spill] sm:$0xff] %v6140_v44  ;;  %v2390_v44 = vadd.f32 %v4758_v52, %v6072_v43  ;;  %v2513_v52 = vadd.f32 %v6084_v8, %v2389_v34 }
 0x188   : > { %6308 = vst [vmem:[#allocation10_spill] sm:$0xff] %v6138_v40  ;;  %v6142_v50 = vpop.f32.mrf.mxu0  ;;  %v2512_v40 = vadd.f32 %v4769_v1, %v2388_v58  ;;  %v2391_v1 = vadd.f32 %v2368_v9, %v6078_v57 }
 0x189   : > { %v4839_v48 = vpop.f32.mrf.mxu1  ;;  %v2514_v38 = vadd.f32 %v4772_v55, %v2390_v44  ;;  %v2636_v56 = vadd.f32 %v2605_v4, %v2513_v52 }
 0x18a   : > { %v6144_v54 = vpop.f32.mrf.mxu0  ;;  %v2635_v51 = vadd.f32 %v4783_v18, %v2512_v40  ;;  %v2515_v9 = vadd.f32 %v6088_v10, %v2391_v1  ;;  %v2518_v40 = vadd.f32 %v6092_v13, %v2394_v33 }
 0x18b   : > { %v3205_v53 = vpop.f32.mrf.mxu1  ;;  %6310 = vst [vmem:[#allocation12_spill] sm:$0xff] %v6144_v54  ;;  %v2511_v54 = vadd.f32 %v2472_v6, %v2387_v63  ;;  %v2637_v63 = vadd.f32 %v4786_v12, %v2514_v38  ;;  %v2801_v4 = vadd.f32 %v6100_v11, %v2636_v56 }
 0x18c   : > { %v6149_v61 = vpop.f32.mrf.mxu0  ;;  %v2800_v6 = vadd.f32 %v4797_v19, %v2635_v51  ;;  %v2638_v44 = vadd.f32 %v6106_v22, %v2515_v9 }
 0x18d   : > { %v6147_v59 = vpop.f32.mrf.mxu1  ;;  %6311 = vst [vmem:[#allocation13_spill] sm:$0xff] %v6149_v61  ;;  %v2802_v12 = vadd.f32 %v6098_v15, %v2637_v63  ;;  %v2804_v15 = vadd.f32 %v6104_v16, %v2639_v62  ;;  %v2967_v13 = vadd.f32 %v6122_v36, %v2801_v4  ;;  %v6314_v1 = vld [vmem:[#allocation8_spill] sm:$0xff] }
 0x18e   : > { %v6154_v47 = vpop.f32.mrf.mxu0  ;;  %v2966_v57 = vadd.f32 %v4811_v28, %v2800_v6  ;;  %v2803_v22 = vadd.f32 %v6108_v23, %v2638_v44 }
 0x18f   : > { %v6152_v45 = vpop.f32.mrf.mxu1  ;;  %v2968_v10 = vadd.f32 %v4814_v32, %v2802_v12  ;;  %v3125_v36 = vadd.f32 %v6124_v37, %v2967_v13  ;;  %v6319_v56 = vld [vmem:[#allocation10_spill] sm:$0xff] }
 0x190   : > { %6312 = vst [vmem:[#allocation14_spill] sm:$0xff] %v6152_v45  ;;  %v6159_v46 = vpop.f32.mrf.mxu0  ;;  %v2634_v45 = vadd.f32 %v2595_v20, %v2511_v54  ;;  %v2393_v20 = vadd.f32 %v6094_v5, %v6082_v2  ;;  %v3124_v28 = vadd.f32 %v4825_v29, %v2966_v57  ;;  %v2641_v2 = vadd.f32 %v6110_v24, %v2518_v40 }
 0x191   : > { %v6157_v41 = vpop.f32.mrf.mxu1  ;;  %v3126_v32 = vadd.f32 %v6120_v35, %v2968_v10  ;;  %v2969_v16 = vadd.f32 %v6130_v42, %v2803_v22 }
 0x192   : > { %v6164_v61 = vpop.f32.mrf.mxu0  ;;  %v2799_v55 = vadd.f32 %v2760_v21, %v2634_v45  ;;  %v2517_v45 = vadd.f32 %v6096_v17, %v2393_v20  ;;  %v2970_v17 = vadd.f32 %v6126_v39, %v2804_v15  ;;  %v2806_v51 = vadd.f32 %v6112_v25, %v2641_v2  ;;  %v6316_v25 = vld [vmem:[#allocation12_spill] sm:$0xff]  ;;  %v6322_v2 = vld [vmem:[#allocation11_spill] sm:$0xff] }
 0x193   : > { %v6162_v27 = vpop.f32.mrf.mxu1 }
 0x194   : > { %v6170_v43 = vpop.f32.mrf.mxu0  ;;  %v2965_v0 = vadd.f32 %v2926_v30, %v2799_v55  ;;  %v3245_v30 = vadd.f32 %v4839_v48, %v3124_v28  ;;  %v2640_v34 = vadd.f32 %v6114_v26, %v2517_v45  ;;  %v3247_v26 = vadd.f32 %v6147_v59, %v3126_v32  ;;  %v6313_v48 = vld [vmem:[#allocation5_spill] sm:$0xff]  ;;  %v6318_v55 = vld [vmem:[#allocation7_spill] sm:$0xff] }
 0x195   : > { %v6168_v58 = vpop.f32.mrf.mxu1  ;;  %v2972_v35 = vadd.f32 %v6314_v1, %v2806_v51  ;;  %v3127_v37 = vadd.f32 %v6318_v55, %v2969_v16  ;;  %v6320_v9 = vld [vmem:[#allocation13_spill] sm:$0xff] }
 0x196   : > { %v6177_v18 = vpop.f32.mrf.mxu0  ;;  %v3123_v14 = vadd.f32 %v6118_v31, %v2965_v0  ;;  %v3369_v23 = vadd.f32 %v6142_v50, %v3245_v30  ;;  %v2805_v3 = vadd.f32 %v6313_v48, %v2640_v34  ;;  %v3371_v20 = vadd.f32 %v6320_v9, %v3247_v26  ;;  %v6321_v0 = vld [vmem:[#allocation9_spill] sm:$0xff] }
 0x197   : > { %v6175_v7 = vpop.f32.mrf.mxu1  ;;  %v6317_v42 = vld [vmem:[#allocation14_spill] sm:$0xff]  ;;  %v3130_v40 = vadd.f32 %v6321_v0, %v2972_v35  ;;  %v3248_v44 = vadd.f32 %v6162_v27, %v3127_v37 }
 0x198   : > { %v4881_v19 = vpop.f32.mrf.mxu0  ;;  %v3244_v24 = vadd.f32 %v3205_v53, %v3123_v14  ;;  %v6315_v53 = vld [vmem:[#allocation6_spill] sm:$0xff]  ;;  %v3246_v33 = vadd.f32 %v6317_v42, %v3125_v36  ;;  %v2971_v50 = vadd.f32 %v6319_v56, %v2805_v3 }
 0x199   : > { %v4867_v8 = vpop.f32.mrf.mxu1  ;;  %v3128_v6 = vadd.f32 %v6315_v53, %v2970_v17  ;;  %v3251_v14 = vadd.f32 %v6168_v58, %v3130_v40  ;;  %v3372_v27 = vadd.f32 %v6164_v61, %v3248_v44 }
 0x19a   : > { %v3573_v21 = vpop.f32.mrf.mxu0  ;;  %v3368_v63 = vadd.f32 %v6316_v25, %v3244_v24  ;;  %v3492_v49 = vadd.f32 %v4867_v8, %v3369_v23  ;;  %v3370_v8 = vadd.f32 %v6154_v47, %v3246_v33  ;;  %v3129_v15 = vadd.f32 %v6322_v2, %v2971_v50 }
 0x19b   : > { %v3452_v60 = vpop.f32.mrf.mxu1  ;;  %v3249_v12 = vadd.f32 %v6157_v41, %v3128_v6  ;;  %v3375_v16 = vadd.f32 %v6170_v43, %v3251_v14 }
 0x19c   : > { %v4884_v54 = vpop.f32.mrf.mxu0  ;;  %v3491_v62 = vadd.f32 %v3452_v60, %v3368_v63  ;;  %v3613_v10 = vadd.f32 %v4881_v19, %v3492_v49  ;;  %v3250_v32 = vadd.f32 %v6175_v7, %v3129_v15 }
 0x19d   : > { %v4870_v5 = vpop.f32.mrf.mxu1  ;;  %v3373_v41 = vadd.f32 %v6159_v46, %v3249_v12 }
 0x19e   : > { %v3583_v29 = vpop.f32.mrf.mxu0  ;;  %v3494_v45 = vadd.f32 %v4870_v5, %v3371_v20  ;;  %v3612_v60 = vadd.f32 %v3573_v21, %v3491_v62 }
 0x19f   : > { %v3462_v11 = vpop.f32.mrf.mxu1 }
 0x1a0   : > { %v4887_v31 = vpop.f32.mrf.mxu0  ;;  %v3493_v22 = vadd.f32 %v3462_v11, %v3370_v8  ;;  %v3615_v5 = vadd.f32 %v4884_v54, %v3494_v45  ;;  %v3374_v54 = vadd.f32 %v6177_v18, %v3250_v32 }
 0x1a1   : > { %v4873_v38 = vpop.f32.mrf.mxu1 }
 0x1a2   : > { %v3593_v39 = vpop.f32.mrf.mxu0  ;;  %v3496_v17 = vadd.f32 %v4873_v38, %v3373_v41  ;;  %v3614_v46 = vadd.f32 %v3583_v29, %v3493_v22 }
 0x1a3   : > { %v3472_v52 = vpop.f32.mrf.mxu1 }
 0x1a4   : > { %v4890_v59 = vpop.f32.mrf.mxu0  ;;  %v3495_v21 = vadd.f32 %v3472_v52, %v3372_v27  ;;  %v3617_v23 = vadd.f32 %v4887_v31, %v3496_v17 }
 0x1a5   : > { %v4876_v57 = vpop.f32.mrf.mxu1 }
 0x1a6   : > { %v3603_v28 = vpop.f32.mrf.mxu0  ;;  %v3498_v43 = vadd.f32 %v4876_v57, %v3375_v16  ;;  %v3616_v1 = vadd.f32 %v3593_v39, %v3495_v21 }
 0x1a7   : > { %v3482_v4 = vpop.f32.mrf.mxu1 }
 0x1a8   : > { %v4909_v30 = vpop.f32.mrf.mxu0  ;;  %v3497_v35 = vadd.f32 %v3482_v4, %v3374_v54  ;;  %v3619_v31 = vadd.f32 %v4890_v59, %v3498_v43 }
 0x1a9   : > { %v4895_v13 = vpop.f32.mrf.mxu1 }
 0x1aa   : > { %v3737_v34 = vadd.f32 %v4895_v13, %v3613_v10  ;;  %v3820_v19 = vpop.f32.mrf.mxu0  ;;  %v3618_v49 = vadd.f32 %v3603_v28, %v3497_v35 }
 0x1ab   : > { %v3697_v47 = vpop.f32.mrf.mxu1 }
 0x1ac   : > { %v3860_v24 = vadd.f32 %v4909_v30, %v3737_v34  ;;  %v3736_v51 = vadd.f32 %v3697_v47, %v3612_v60  ;;  %v4912_v36 = vpop.f32.mrf.mxu0 }
 0x1ad   : > { %v4898_v58 = vpop.f32.mrf.mxu1 }
 0x1ae   : > { %3868 = vst [vmem:[%s6223_s27 + $0x8] sm:$0xff] %v3860_v24  ;;  %v3859_v61 = vadd.f32 %v3820_v19, %v3736_v51  ;;  %v3739_v7 = vadd.f32 %v4898_v58, %v3615_v5  ;;  %v3830_v38 = vpop.f32.mrf.mxu0 }
 0x1af   : > { %v3707_v11 = vpop.f32.mrf.mxu1 }
 0x1b0   : > { %3867 = vst [vmem:[%s6223_s27] sm:$0xff] %v3859_v61  ;;  %v3862_v26 = vadd.f32 %v4912_v36, %v3739_v7  ;;  %v3738_v48 = vadd.f32 %v3707_v11, %v3614_v46  ;;  %v4915_v3 = vpop.f32.mrf.mxu0 }
 0x1b1   : > { %v4901_v29 = vpop.f32.mrf.mxu1 }
 0x1b2   : > { %3870 = vst [vmem:[%s6223_s27 + $0x18] sm:$0xff] %v3862_v26  ;;  %v3861_v52 = vadd.f32 %v3830_v38, %v3738_v48  ;;  %v3741_v53 = vadd.f32 %v4901_v29, %v3617_v23  ;;  %v3840_v6 = vpop.f32.mrf.mxu0 }
 0x1b3   : > { %v3717_v18 = vpop.f32.mrf.mxu1 }
 0x1b4   : > { %3869 = vst [vmem:[%s6223_s27 + $0x10] sm:$0xff] %v3861_v52  ;;  %v3864_v25 = vadd.f32 %v4915_v3, %v3741_v53  ;;  %v3740_v63 = vadd.f32 %v3717_v18, %v3616_v1  ;;  %v4918_v33 = vpop.f32.mrf.mxu0 }
 0x1b5   : > { %v4904_v42 = vpop.f32.mrf.mxu1 }
 0x1b6   : > { %3872 = vst [vmem:[%s6223_s27 + $0x28] sm:$0xff] %v3864_v25  ;;  %v3863_v39 = vadd.f32 %v3840_v6, %v3740_v63  ;;  %v3743_v55 = vadd.f32 %v4904_v42, %v3619_v31  ;;  %v3850_v57 = vpop.f32.mrf.mxu0 }
 0x1b7   : > { %v3727_v37 = vpop.f32.mrf.mxu1 }
 0x1b8   : > { %3871 = vst [vmem:[%s6223_s27 + $0x20] sm:$0xff] %v3863_v39  ;;  %v3866_v56 = vadd.f32 %v4918_v33, %v3743_v55  ;;  %v3742_v50 = vadd.f32 %v3727_v37, %v3618_v49 }
 0x1ba   : > { %3874 = vst [vmem:[%s6223_s27 + $0x38] sm:$0xff] %v3866_v56  ;;  %v3865_v59 = vadd.f32 %v3850_v57, %v3742_v50 }
 0x1bc   : > { %3873 = vst [vmem:[%s6223_s27 + $0x30] sm:$0xff] %v3865_v59 }
 0x1bd   : > { %5008 = shalt.err (!%p5005_p6)
}
 0x1be   : > { %s5009_s28 = scalar_lea.hbm %s6238_s8, 1024  ;;  %s5013_s29 = scalar_lea.hbm %s6300_s3, 16384 }
 0x1bf   : > { %p5010_p7 = scmp.ne.s32.totalorder %s6238_s8, %s5009_s28  ;;  %p5014_p11 = scmp.lt.s32.totalorder %s6238_s8, %s6300_s3 }
 0x1c0   : > { %p5015_p12 = scmp.lt.s32.totalorder %s5013_s29, %s5009_s28 }
 0x1c1   : > { %p5011_p9 = pnand %p5010_p7, %p5163_p3 }
 0x1c2   : > { %p5016_p13 = por %p5015_p12, %p5014_p11 }
 0x1c3   : > { %p5012_p10 = pneg %p5011_p9 }
 0x1c5   : > { %p5017_p0 = pnand %p5016_p13, %p5012_p10 }
 0x1c7   : > { %5020 = shalt.err (!%p5017_p0)
}
 0x1c8   : > { %s5090_s15 = smov 128   ;;  %s5091_s6 = smov 8  }
 0x1c9   : > { %4922 = dma.vmem_to_hbm [thread:$0]  (%p5163_p3), %s6240_s16, 1024, %s6238_s8, %s6246_s9, %s5090_s15, %s5090_s15, %s5091_s6  }
 0x1ca PF: > { %p4928_p1 = scmp.ge.s32.totalorder %s5087_s19, 2  ;;  %s3906_s7 = sand.u32 1, %s5059_s12  }
 0x1cb   : > { %s3907_s10 = scalar_lea.sflag [#allocation3], %s3906_s7 }
 0x1cc   : > { %p4925_p2 = pnand %p4928_p1, %p5172_p8 }
 0x1ce   : > { %p4926_p4 = pneg %p4925_p2 }
 0x1d0   : > { %5054 = dma.done.wait (%p4926_p4), %s3907_s10, 1024  }
 0x1d1   : > { %5056 = vsyncadd (%p4926_p4), %s3907_s10, 4294966272  ;;  %s16_s19 = sadd.s32 1, %s5087_s19   ;;  %s6323_s12 = smov %s5063_s13 }
 0x1d2   : > { %p13_p5 = scmp.ge.s32.totalorder %s16_s19, 18   ;;  %s6324_s13 = smov %s5067_s14 }
 0x1d3   : > { %s6325_s14 = smov %s5181_s30  ;;  %s6326_s15 = smov %s5079_s17 }
 0x1d4   : > { %s6327_s16 = smov %s5083_s18  ;;  %s6328_s17 = smov %s6331_s22 }
 0x1d5   : > { %s6329_s18 = smov %s6335_s23  ;;  %15 = sbr.rel (!%p13_p5) target bundleno = 5 (0x5), region = 96 }
 0x1da   :  { %3912 = vsyncpa [#allocation3], 1 }
 0x1db   :  { %3914 = vsyncpa [#allocation3 + $0x1], 1 }

</bundles_post_ra>
